<compile_context>
chip_gen: v7x
topology: tpu7x:2x2x1
jax: 0.10.0
libtpu: 0.0.40
codegen_flags: <defaults>
</compile_context>

<pallas_src>
import functools

import jax
import jax.numpy as jnp
import numpy as np
from jax import lax
from jax.experimental import pallas as pl
from jax.experimental.pallas import tpu as pltpu


_EPS = 1e-6  # matches nn.LayerNorm(eps=1e-06) in the PyTorch module


def _layer_norm(y, g, b):
    m = jnp.mean(y, axis=-1, keepdims=True)
    var = jnp.mean((y - m) ** 2, axis=-1, keepdims=True)
    return (y - m) * lax.rsqrt(var + _EPS) * g + b


# ----------------------------- kernel -----------------------------------------

def _encoder_stack_kernel(x_ref, wqkv_ref, wo_ref, w1_ref, w2_ref, misc_ref, o_ref,
                          *, head, d_k, d_v, d_hidden):
    # Layer 0: bring the input activation into the resident output block.  For l > 0 the
    # previous layer's output is still resident in VMEM (same output block index across the
    # inner "arbitrary" layer axis), so the activation never round-trips HBM between layers.
    @pl.when(pl.program_id(1) == 0)
    def _():
        o_ref[...] = x_ref[...]

    bt, s_len, d_feat = o_ref.shape
    hk, hv = head * d_k, head * d_v
    c_tot = 2 * hk + hv

    x = o_ref[...].reshape(bt * s_len, d_feat)          # (Bt*S, D) f32
    x_bf = x.astype(jnp.bfloat16)

    # packed small f32 per-layer operands: one slab, sliced at static offsets
    misc = misc_ref[0]                                   # (8, Wmax) f32
    bqkv = misc[0:1, :c_tot]
    bo = misc[1:2, :d_feat]
    b1 = misc[2:3, :d_hidden]
    b2 = misc[3:4, :d_feat]
    ln1g = misc[4:5, :d_feat]
    ln1b = misc[5:6, :d_feat]
    ln2g = misc[6:7, :d_feat]
    ln2b = misc[7:8, :d_feat]

    # ---- fused QKV: ONE lane-dense 2D matmul (1/sqrt(d_k) pre-folded into Q columns) ----
    qkv = jnp.dot(x_bf, wqkv_ref[0], preferred_element_type=jnp.float32) + bqkv   # (Bt*S, C)

    # ---- attention: per batch row, heads batched on the MXU via rank-3 dot_general ----
    ctx_rows = []
    for b in range(bt):                                  # static unroll; bt is small
        r0 = b * s_len
        blk = qkv[r0:r0 + s_len, :]                      # (S, C)
        q3 = jnp.stack([blk[:, h * d_k:(h + 1) * d_k]
                        for h in range(head)], 0).astype(jnp.bfloat16)            # (H,S,dk)
        k3 = jnp.stack([blk[:, hk + h * d_k:hk + (h + 1) * d_k]
                        for h in range(head)], 0).astype(jnp.bfloat16)            # (H,S,dk)
        v3 = jnp.stack([blk[:, 2 * hk + h * d_v:2 * hk + (h + 1) * d_v]
                        for h in range(head)], 0).astype(jnp.bfloat16)            # (H,S,dv)
        scores = lax.dot_general(q3, k3, (((2,), (2,)), ((0,), (0,))),
                                 preferred_element_type=jnp.float32)              # (H,S,S)
        attn = jax.nn.softmax(scores, axis=-1)                                    # f32
        # TODO(synk): dropout (attention / output / MLP) is identity — inference semantics.
        ctx = lax.dot_general(attn.astype(jnp.bfloat16), v3, (((2,), (1,)), ((0,), (0,))),
                              preferred_element_type=jnp.float32)                 # (H,S,dv)
        # re-assemble heads into a lane slab (small relayout, head-major == PyTorch view order)
        ctx_rows.append(jnp.concatenate([ctx[h] for h in range(head)], axis=-1))  # (S, H*dv)

    ctx_all = ctx_rows[0] if bt == 1 else jnp.concatenate(ctx_rows, axis=0)       # (Bt*S, H*dv)

    # ---- output projection: single matmul, contraction K = H*dv ----
    attn_out = jnp.dot(ctx_all.astype(jnp.bfloat16), wo_ref[0],
                       preferred_element_type=jnp.float32) + bo                   # (Bt*S, D)

    res1 = attn_out + x
    ln1 = _layer_norm(res1, ln1g, ln1b)

    # ---- MLP (bf16 MXU operands, f32 accumulation / elementwise) ----
    h1 = jnp.dot(ln1.astype(jnp.bfloat16), w1_ref[0],
                 preferred_element_type=jnp.float32) + b1
    h1 = jnp.maximum(h1, 0.0)
    h2 = jnp.dot(h1.astype(jnp.bfloat16), w2_ref[0],
                 preferred_element_type=jnp.float32) + b2
    res2 = h2 + ln1

    o_ref[...] = _layer_norm(res2, ln2g, ln2b).reshape(bt, s_len, d_feat)


# ----------------------------- parameter packing --------------------------------

def _pack_encoder_params(layer_params, *, head, d_k, d_v):
    """Stack per-layer params along a leading layer axis in kernel-ready layout.

    Matmul weights -> bfloat16; biases / LayerNorm params packed into one f32 slab.
    The 1/sqrt(d_k) scale is folded into the Q weight columns and Q bias.
    """
    inv_temp = 1.0 / (d_k ** 0.5)
    d_feat = layer_params[0]["wq"].shape[0]
    d_hidden = layer_params[0]["w1"].shape[1]
    hk, hv = head * d_k, head * d_v
    c_tot = 2 * hk + hv
    w_max = max(c_tot, d_feat, d_hidden)

    def pad_row(v):
        return jnp.pad(v, ((0, 0), (0, w_max - v.shape[-1])))

    wqkv, wo, w1, w2, misc = [], [], [], [], []
    for p in layer_params:
        wqkv.append(jnp.concatenate([p["wq"] * inv_temp, p["wk"], p["wv"]], axis=1))  # (D, C)
        wo.append(p["wo"])                                                            # (H*dv, D)
        w1.append(p["w1"])                                                            # (D, DH)
        w2.append(p["w2"])                                                            # (DH, D)
        bqkv = jnp.concatenate([p["bq"] * inv_temp, p["bk"], p["bv"]], axis=1)        # (1, C)
        rows = [bqkv, p["bo"], p["b1"], p["b2"],
                p["ln1_g"], p["ln1_b"], p["ln2_g"], p["ln2_b"]]
        misc.append(jnp.concatenate([pad_row(r) for r in rows], axis=0))              # (8, Wmax)

    st = lambda xs, dt: jnp.stack(xs, axis=0).astype(dt)
    packed = (st(wqkv, jnp.bfloat16), st(wo, jnp.bfloat16),
              st(w1, jnp.bfloat16), st(w2, jnp.bfloat16), st(misc, jnp.float32))
    return packed, d_hidden


# ----------------------------- wrapper -----------------------------------------

def encoder_forward(x, layer_params, *, head, d_k, d_v, batch_tile=None):
    B, S, D = x.shape
    packed, d_hidden = _pack_encoder_params(layer_params, head=head, d_k=d_k, d_v=d_v)
    wqkv, wo, w1, w2, misc = packed
    n_layers = wqkv.shape[0]
    hk, hv = head * d_k, head * d_v
    c_tot = 2 * hk + hv

    if batch_tile is None:
        # Fold the whole batch into one block so the per-layer weights stream from HBM once.
        # For larger batches keep >=2 batch blocks (feeds both TensorCores on v7x).
        batch_tile = B // 2 if (B % 2 == 0 and B > 2) else B
    assert B % batch_tile == 0, "batch must be divisible by batch_tile"

    def wspec(p):
        nd = p.ndim
        return pl.BlockSpec((1,) + p.shape[1:],
                            lambda b, l, _n=nd: (l,) + (0,) * (_n - 1))

    # ---- explicit VMEM budget (double-buffered weight blocks + resident act + temporaries) ----
    w_bytes = 2 * 2 * (wqkv[0].size + wo[0].size + w1[0].size + w2[0].size) \
              + 2 * 4 * misc[0].size
    act_bytes = 3 * batch_tile * S * D * 4
    inter = (batch_tile * S * c_tot * 6              # qkv f32 + bf16 head stacks
             + batch_tile * head * S * S * 6         # scores f32 + attn bf16
             + batch_tile * S * hv * 4               # context slab
             + batch_tile * S * d_hidden * 4         # MLP hidden
             + 4 * batch_tile * S * D * 4)           # residual / layernorm temporaries
    vmem_limit = int(min(max(2 * (w_bytes + act_bytes + inter), 32 * 2**20), 60 * 2**20))

    kernel = functools.partial(_encoder_stack_kernel, head=head, d_k=d_k, d_v=d_v,
                               d_hidden=d_hidden)
    return pl.pallas_call(
        kernel,
        out_shape=jax.ShapeDtypeStruct((B, S, D), jnp.float32),
        grid=(B // batch_tile, n_layers),
        in_specs=[pl.BlockSpec((batch_tile, S, D), lambda b, l: (b, 0, 0)),
                  wspec(wqkv), wspec(wo), wspec(w1), wspec(w2), wspec(misc)],
        out_specs=pl.BlockSpec((batch_tile, S, D), lambda b, l: (b, 0, 0)),
        compiler_params=pltpu.CompilerParams(
            dimension_semantics=("parallel", "arbitrary"),
            vmem_limit_bytes=vmem_limit),
    )(x, wqkv, wo, w1, w2, misc)


# ----------------------------- parameter init -----------------------------------

def init_layer_params(key, d_feature, d_hidden, d_k, d_v, head):
    ks = jax.random.split(key, 12)
    hk, hv = head * d_k, head * d_v

    def lin(kw, kb, fan_in, fan_out):
        # stored as (in, out); equivalent to PyTorch weight (out, in) transposed
        w = jax.random.normal(kw, (fan_in, fan_out), jnp.float32) * 0.05
        b = jax.random.normal(kb, (1, fan_out), jnp.float32) * 0.02
        return w, b

    wq, bq = lin(ks[0], ks[1], d_feature, hk)
    wk, bk = lin(ks[2], ks[3], d_feature, hk)
    wv, bv = lin(ks[4], ks[5], d_feature, hv)
    wo, bo = lin(ks[6], ks[7], hv, d_feature)
    w1, b1 = lin(ks[8], ks[9], d_feature, d_hidden)
    w2, b2 = lin(ks[10], ks[11], d_hidden, d_feature)
    return {
        "wq": wq, "bq": bq, "wk": wk, "bk": bk, "wv": wv, "bv": bv,
        "wo": wo, "bo": bo,
        "ln1_g": jnp.ones((1, d_feature), jnp.float32),
        "ln1_b": jnp.zeros((1, d_feature), jnp.float32),
        "w1": w1, "b1": b1, "w2": w2, "b2": b2,
        "ln2_g": jnp.ones((1, d_feature), jnp.float32),
        "ln2_b": jnp.zeros((1, d_feature), jnp.float32),
    }


# ----------------------------- pure-JAX f32 reference ----------------------------

def _ref_layer(x, p, head, d_k, d_v):
    B, S, D = x.shape
    q = (x @ p["wq"] + p["bq"]).reshape(B, S, head, d_k).transpose(0, 2, 1, 3)
    k = (x @ p["wk"] + p["bk"]).reshape(B, S, head, d_k).transpose(0, 2, 3, 1)
    v = (x @ p["wv"] + p["bv"]).reshape(B, S, head, d_v).transpose(0, 2, 1, 3)
    attn = jax.nn.softmax((q / (d_k ** 0.5)) @ k, axis=-1)
    out = (attn @ v).transpose(0, 2, 1, 3).reshape(B, S, head * d_v)
    out = out @ p["wo"] + p["bo"] + x
    out = _layer_norm(out, p["ln1_g"], p["ln1_b"])
    h = jnp.maximum(out @ p["w1"] + p["b1"], 0.0)
    out2 = h @ p["w2"] + p["b2"] + out
    return _layer_norm(out2, p["ln2_g"], p["ln2_b"])


def _ref_encoder(x, layer_params, head, d_k, d_v):
    for p in layer_params:
        x = _ref_layer(x, p, head, d_k, d_v)
    return x


# ----------------------------- main ----------------------------------------------

if __name__ == "__main__":
    n_layers = 2
    batch, seq = 2, 8
    d_feature, d_hidden, d_k, d_v, head = 32, 64, 16, 16, 4

    key = jax.random.PRNGKey(0)
    key, xk = jax.random.split(key)
    x = jax.random.normal(xk, (batch, seq, d_feature), jnp.float32)

    layer_keys = jax.random.split(key, n_layers)
    layer_params = [init_layer_params(lk, d_feature, d_hidden, d_k, d_v, head)
                    for lk in layer_keys]

    out = encoder_forward(x, layer_params, head=head, d_k=d_k, d_v=d_v)
    out = jax.block_until_ready(out)

    ref = _ref_encoder(x, layer_params, head, d_k, d_v)
    # Tolerance accounts for bf16 MXU operands in the kernel vs the all-f32 reference.
    np.testing.assert_allclose(np.asarray(out), np.asarray(ref), atol=5e-2, rtol=5e-2)

    print("KERNEL_OK")
</pallas_src>

<mosaic_0001>
module attributes {stable_mosaic.version = 11 : i64} {
  func.func @_encoder_stack_kernel(%arg0: i32, %arg1: i32, %arg2: memref<2x8x32xf32, #tpu.memory_space<vmem>>, %arg3: memref<1x32x192xbf16, #tpu.memory_space<vmem>>, %arg4: memref<1x64x32xbf16, #tpu.memory_space<vmem>>, %arg5: memref<1x32x64xbf16, #tpu.memory_space<vmem>>, %arg6: memref<1x64x32xbf16, #tpu.memory_space<vmem>>, %arg7: memref<1x8x192xf32, #tpu.memory_space<vmem>>, %arg8: memref<2x8x32xf32, #tpu.memory_space<vmem>>) attributes {dimension_semantics = [#tpu.dimension_semantics<parallel>, #tpu.dimension_semantics<arbitrary>], iteration_bounds = array<i64: 1, 2>, scalar_prefetch = 0 : i64, scratch_operands = 0 : i64, tpu.core_type = #tpu.core_type<tc>, window_params = [{transform_indices = @transform_0, window_bounds = array<i64: 2, 8, 32>}, {transform_indices = @transform_1, window_bounds = array<i64: 1, 32, 192>}, {transform_indices = @transform_2, window_bounds = array<i64: 1, 64, 32>}, {transform_indices = @transform_3, window_bounds = array<i64: 1, 32, 64>}, {transform_indices = @transform_4, window_bounds = array<i64: 1, 64, 32>}, {transform_indices = @transform_5, window_bounds = array<i64: 1, 8, 192>}, {transform_indices = @transform_6, window_bounds = array<i64: 2, 8, 32>}]} {
    %c0_i32 = arith.constant 0 : i32
    %0 = arith.cmpi eq, %arg1, %c0_i32 : i32
    %1 = arith.extui %0 : i1 to i32
    %c0_i32_0 = arith.constant 0 : i32
    %2 = arith.cmpi ne, %1, %c0_i32_0 : i32
    scf.if %2 {
      %c0_45 = arith.constant 0 : index
      %c0_46 = arith.constant 0 : index
      %c0_47 = arith.constant 0 : index
      %198 = vector.load %arg2[%c0_45, %c0_46, %c0_47] : memref<2x8x32xf32, #tpu.memory_space<vmem>>, vector<2x8x32xf32>
      %c0_48 = arith.constant 0 : index
      %c0_49 = arith.constant 0 : index
      %c0_50 = arith.constant 0 : index
      %199 = vector.load %arg8[%c0_48, %c0_49, %c0_50] : memref<2x8x32xf32, #tpu.memory_space<vmem>>, vector<2x8x32xf32>
      tpu.vector_store %arg8[%c0_48, %c0_49, %c0_50], %198 {strides = array<i32>} : memref<2x8x32xf32, #tpu.memory_space<vmem>>, vector<2x8x32xf32>,
    } else {
    }
    %c0 = arith.constant 0 : index
    %c0_1 = arith.constant 0 : index
    %c0_2 = arith.constant 0 : index
    %3 = vector.load %arg8[%c0, %c0_1, %c0_2] : memref<2x8x32xf32, #tpu.memory_space<vmem>>, vector<2x8x32xf32>
    %4 = vector.shape_cast %3 : vector<2x8x32xf32> to vector<16x32xf32>
    %5 = arith.truncf %4 : vector<16x32xf32> to vector<16x32xbf16>
    %c0_3 = arith.constant 0 : index
    %c0_4 = arith.constant 0 : index
    %c0_5 = arith.constant 0 : index
    %6 = vector.load %arg7[%c0_3, %c0_4, %c0_5] : memref<1x8x192xf32, #tpu.memory_space<vmem>>, vector<1x8x192xf32>
    %7 = vector.shape_cast %6 : vector<1x8x192xf32> to vector<8x192xf32>
    %8 = vector.extract_strided_slice %7 {offsets = [0, 0], sizes = [1, 192], strides = [1, 1]} : vector<8x192xf32> to vector<1x192xf32>
    %9 = vector.extract_strided_slice %7 {offsets = [1, 0], sizes = [1, 32], strides = [1, 1]} : vector<8x192xf32> to vector<1x32xf32>
    %10 = vector.extract_strided_slice %7 {offsets = [2, 0], sizes = [1, 64], strides = [1, 1]} : vector<8x192xf32> to vector<1x64xf32>
    %11 = vector.extract_strided_slice %7 {offsets = [3, 0], sizes = [1, 32], strides = [1, 1]} : vector<8x192xf32> to vector<1x32xf32>
    %12 = vector.extract_strided_slice %7 {offsets = [4, 0], sizes = [1, 32], strides = [1, 1]} : vector<8x192xf32> to vector<1x32xf32>
    %13 = vector.extract_strided_slice %7 {offsets = [5, 0], sizes = [1, 32], strides = [1, 1]} : vector<8x192xf32> to vector<1x32xf32>
    %14 = vector.extract_strided_slice %7 {offsets = [6, 0], sizes = [1, 32], strides = [1, 1]} : vector<8x192xf32> to vector<1x32xf32>
    %15 = vector.extract_strided_slice %7 {offsets = [7, 0], sizes = [1, 32], strides = [1, 1]} : vector<8x192xf32> to vector<1x32xf32>
    %c0_6 = arith.constant 0 : index
    %c0_7 = arith.constant 0 : index
    %c0_8 = arith.constant 0 : index
    %16 = vector.load %arg3[%c0_6, %c0_7, %c0_8] : memref<1x32x192xbf16, #tpu.memory_space<vmem>>, vector<1x32x192xbf16>
    %17 = vector.shape_cast %16 : vector<1x32x192xbf16> to vector<32x192xbf16>
    %cst = arith.constant dense<0.000000e+00> : vector<16x192xf32>
    %18 = tpu.matmul %5, %17, %cst {dimension_numbers = #tpu.dot_dimension_numbers<[1], [0], [0], [1], [0, 0, 1, 1], [], []>} : vector<16x32xbf16>, vector<32x192xbf16>, vector<16x192xf32> -> vector<16x192xf32>
    %19 = vector.broadcast %8 : vector<1x192xf32> to vector<16x192xf32>
    %20 = arith.addf %18, %19 : vector<16x192xf32>
    %21 = vector.extract_strided_slice %20 {offsets = [0, 0], sizes = [8, 192], strides = [1, 1]} : vector<16x192xf32> to vector<8x192xf32>
    %22 = vector.extract_strided_slice %21 {offsets = [0, 0], sizes = [8, 16], strides = [1, 1]} : vector<8x192xf32> to vector<8x16xf32>
    %23 = vector.extract_strided_slice %21 {offsets = [0, 16], sizes = [8, 16], strides = [1, 1]} : vector<8x192xf32> to vector<8x16xf32>
    %24 = vector.extract_strided_slice %21 {offsets = [0, 32], sizes = [8, 16], strides = [1, 1]} : vector<8x192xf32> to vector<8x16xf32>
    %25 = vector.extract_strided_slice %21 {offsets = [0, 48], sizes = [8, 16], strides = [1, 1]} : vector<8x192xf32> to vector<8x16xf32>
    %26 = vector.shape_cast %22 : vector<8x16xf32> to vector<1x8x16xf32>
    %27 = vector.shape_cast %23 : vector<8x16xf32> to vector<1x8x16xf32>
    %28 = vector.shape_cast %24 : vector<8x16xf32> to vector<1x8x16xf32>
    %29 = vector.shape_cast %25 : vector<8x16xf32> to vector<1x8x16xf32>
    %30 = tpu.concatenate %26, %27, %28, %29 in 0 : vector<1x8x16xf32>, vector<1x8x16xf32>, vector<1x8x16xf32>, vector<1x8x16xf32> -> vector<4x8x16xf32>
    %31 = arith.truncf %30 : vector<4x8x16xf32> to vector<4x8x16xbf16>
    %32 = vector.extract_strided_slice %21 {offsets = [0, 64], sizes = [8, 16], strides = [1, 1]} : vector<8x192xf32> to vector<8x16xf32>
    %33 = vector.extract_strided_slice %21 {offsets = [0, 80], sizes = [8, 16], strides = [1, 1]} : vector<8x192xf32> to vector<8x16xf32>
    %34 = vector.extract_strided_slice %21 {offsets = [0, 96], sizes = [8, 16], strides = [1, 1]} : vector<8x192xf32> to vector<8x16xf32>
    %35 = vector.extract_strided_slice %21 {offsets = [0, 112], sizes = [8, 16], strides = [1, 1]} : vector<8x192xf32> to vector<8x16xf32>
    %36 = vector.shape_cast %32 : vector<8x16xf32> to vector<1x8x16xf32>
    %37 = vector.shape_cast %33 : vector<8x16xf32> to vector<1x8x16xf32>
    %38 = vector.shape_cast %34 : vector<8x16xf32> to vector<1x8x16xf32>
    %39 = vector.shape_cast %35 : vector<8x16xf32> to vector<1x8x16xf32>
    %40 = tpu.concatenate %36, %37, %38, %39 in 0 : vector<1x8x16xf32>, vector<1x8x16xf32>, vector<1x8x16xf32>, vector<1x8x16xf32> -> vector<4x8x16xf32>
    %41 = arith.truncf %40 : vector<4x8x16xf32> to vector<4x8x16xbf16>
    %42 = vector.extract_strided_slice %21 {offsets = [0, 128], sizes = [8, 16], strides = [1, 1]} : vector<8x192xf32> to vector<8x16xf32>
    %43 = vector.extract_strided_slice %21 {offsets = [0, 144], sizes = [8, 16], strides = [1, 1]} : vector<8x192xf32> to vector<8x16xf32>
    %44 = vector.extract_strided_slice %21 {offsets = [0, 160], sizes = [8, 16], strides = [1, 1]} : vector<8x192xf32> to vector<8x16xf32>
    %45 = vector.extract_strided_slice %21 {offsets = [0, 176], sizes = [8, 16], strides = [1, 1]} : vector<8x192xf32> to vector<8x16xf32>
    %46 = vector.shape_cast %42 : vector<8x16xf32> to vector<1x8x16xf32>
    %47 = vector.shape_cast %43 : vector<8x16xf32> to vector<1x8x16xf32>
    %48 = vector.shape_cast %44 : vector<8x16xf32> to vector<1x8x16xf32>
    %49 = vector.shape_cast %45 : vector<8x16xf32> to vector<1x8x16xf32>
    %50 = tpu.concatenate %46, %47, %48, %49 in 0 : vector<1x8x16xf32>, vector<1x8x16xf32>, vector<1x8x16xf32>, vector<1x8x16xf32> -> vector<4x8x16xf32>
    %51 = arith.truncf %50 : vector<4x8x16xf32> to vector<4x8x16xbf16>
    %cst_9 = arith.constant dense<0.000000e+00> : vector<4x8x8xf32>
    %52 = tpu.matmul %31, %41, %cst_9 {dimension_numbers = #tpu.dot_dimension_numbers<[2], [2], [1], [1], [0, 0, 0, 1, 1, 1], [0], [0]>} : vector<4x8x16xbf16>, vector<4x8x16xbf16>, vector<4x8x8xf32> -> vector<4x8x8xf32>
    %cst_10 = arith.constant dense<0xFF800000> : vector<4x8xf32>
    %53 = vector.multi_reduction <maximumf>, %52, %cst_10 [2] : vector<4x8x8xf32> to vector<4x8xf32>
    %cst_11 = arith.constant 0xFF800000 : f32
    %54 = vector.broadcast %cst_11 : f32 to vector<4x8xf32>
    %55 = arith.maximumf %54, %53 : vector<4x8xf32>
    %56 = vector.shape_cast %55 : vector<4x8xf32> to vector<4x8x1xf32>
    %57 = vector.broadcast %56 : vector<4x8x1xf32> to vector<4x8x8xf32>
    %58 = arith.subf %52, %57 : vector<4x8x8xf32>
    %59 = math.exp %58 : vector<4x8x8xf32>
    %cst_12 = arith.constant dense<0.000000e+00> : vector<4x8xf32>
    %60 = vector.multi_reduction <add>, %59, %cst_12 [2] : vector<4x8x8xf32> to vector<4x8xf32>
    %61 = vector.shape_cast %60 : vector<4x8xf32> to vector<4x8x1xf32>
    %62 = vector.broadcast %61 : vector<4x8x1xf32> to vector<4x8x8xf32>
    %63 = arith.divf %59, %62 : vector<4x8x8xf32>
    %64 = arith.truncf %63 : vector<4x8x8xf32> to vector<4x8x8xbf16>
    %cst_13 = arith.constant dense<0.000000e+00> : vector<4x8x16xf32>
    %65 = tpu.matmul %64, %51, %cst_13 {dimension_numbers = #tpu.dot_dimension_numbers<[2], [1], [1], [2], [0, 0, 0, 1, 1, 2], [0], [0]>} : vector<4x8x8xbf16>, vector<4x8x16xbf16>, vector<4x8x16xf32> -> vector<4x8x16xf32>
    %66 = vector.extract_strided_slice %65 {offsets = [0, 0, 0], sizes = [1, 8, 16], strides = [1, 1, 1]} : vector<4x8x16xf32> to vector<1x8x16xf32>
    %67 = vector.shape_cast %66 : vector<1x8x16xf32> to vector<8x16xf32>
    %68 = vector.extract_strided_slice %65 {offsets = [1, 0, 0], sizes = [1, 8, 16], strides = [1, 1, 1]} : vector<4x8x16xf32> to vector<1x8x16xf32>
    %69 = vector.shape_cast %68 : vector<1x8x16xf32> to vector<8x16xf32>
    %70 = vector.extract_strided_slice %65 {offsets = [2, 0, 0], sizes = [1, 8, 16], strides = [1, 1, 1]} : vector<4x8x16xf32> to vector<1x8x16xf32>
    %71 = vector.shape_cast %70 : vector<1x8x16xf32> to vector<8x16xf32>
    %72 = vector.extract_strided_slice %65 {offsets = [3, 0, 0], sizes = [1, 8, 16], strides = [1, 1, 1]} : vector<4x8x16xf32> to vector<1x8x16xf32>
    %73 = vector.shape_cast %72 : vector<1x8x16xf32> to vector<8x16xf32>
    %74 = tpu.concatenate %67, %69, %71, %73 in 1 : vector<8x16xf32>, vector<8x16xf32>, vector<8x16xf32>, vector<8x16xf32> -> vector<8x64xf32>
    %75 = vector.extract_strided_slice %20 {offsets = [8, 0], sizes = [8, 192], strides = [1, 1]} : vector<16x192xf32> to vector<8x192xf32>
    %76 = vector.extract_strided_slice %75 {offsets = [0, 0], sizes = [8, 16], strides = [1, 1]} : vector<8x192xf32> to vector<8x16xf32>
    %77 = vector.extract_strided_slice %75 {offsets = [0, 16], sizes = [8, 16], strides = [1, 1]} : vector<8x192xf32> to vector<8x16xf32>
    %78 = vector.extract_strided_slice %75 {offsets = [0, 32], sizes = [8, 16], strides = [1, 1]} : vector<8x192xf32> to vector<8x16xf32>
    %79 = vector.extract_strided_slice %75 {offsets = [0, 48], sizes = [8, 16], strides = [1, 1]} : vector<8x192xf32> to vector<8x16xf32>
    %80 = vector.shape_cast %76 : vector<8x16xf32> to vector<1x8x16xf32>
    %81 = vector.shape_cast %77 : vector<8x16xf32> to vector<1x8x16xf32>
    %82 = vector.shape_cast %78 : vector<8x16xf32> to vector<1x8x16xf32>
    %83 = vector.shape_cast %79 : vector<8x16xf32> to vector<1x8x16xf32>
    %84 = tpu.concatenate %80, %81, %82, %83 in 0 : vector<1x8x16xf32>, vector<1x8x16xf32>, vector<1x8x16xf32>, vector<1x8x16xf32> -> vector<4x8x16xf32>
    %85 = arith.truncf %84 : vector<4x8x16xf32> to vector<4x8x16xbf16>
    %86 = vector.extract_strided_slice %75 {offsets = [0, 64], sizes = [8, 16], strides = [1, 1]} : vector<8x192xf32> to vector<8x16xf32>
    %87 = vector.extract_strided_slice %75 {offsets = [0, 80], sizes = [8, 16], strides = [1, 1]} : vector<8x192xf32> to vector<8x16xf32>
    %88 = vector.extract_strided_slice %75 {offsets = [0, 96], sizes = [8, 16], strides = [1, 1]} : vector<8x192xf32> to vector<8x16xf32>
    %89 = vector.extract_strided_slice %75 {offsets = [0, 112], sizes = [8, 16], strides = [1, 1]} : vector<8x192xf32> to vector<8x16xf32>
    %90 = vector.shape_cast %86 : vector<8x16xf32> to vector<1x8x16xf32>
    %91 = vector.shape_cast %87 : vector<8x16xf32> to vector<1x8x16xf32>
    %92 = vector.shape_cast %88 : vector<8x16xf32> to vector<1x8x16xf32>
    %93 = vector.shape_cast %89 : vector<8x16xf32> to vector<1x8x16xf32>
    %94 = tpu.concatenate %90, %91, %92, %93 in 0 : vector<1x8x16xf32>, vector<1x8x16xf32>, vector<1x8x16xf32>, vector<1x8x16xf32> -> vector<4x8x16xf32>
    %95 = arith.truncf %94 : vector<4x8x16xf32> to vector<4x8x16xbf16>
    %96 = vector.extract_strided_slice %75 {offsets = [0, 128], sizes = [8, 16], strides = [1, 1]} : vector<8x192xf32> to vector<8x16xf32>
    %97 = vector.extract_strided_slice %75 {offsets = [0, 144], sizes = [8, 16], strides = [1, 1]} : vector<8x192xf32> to vector<8x16xf32>
    %98 = vector.extract_strided_slice %75 {offsets = [0, 160], sizes = [8, 16], strides = [1, 1]} : vector<8x192xf32> to vector<8x16xf32>
    %99 = vector.extract_strided_slice %75 {offsets = [0, 176], sizes = [8, 16], strides = [1, 1]} : vector<8x192xf32> to vector<8x16xf32>
    %100 = vector.shape_cast %96 : vector<8x16xf32> to vector<1x8x16xf32>
    %101 = vector.shape_cast %97 : vector<8x16xf32> to vector<1x8x16xf32>
    %102 = vector.shape_cast %98 : vector<8x16xf32> to vector<1x8x16xf32>
    %103 = vector.shape_cast %99 : vector<8x16xf32> to vector<1x8x16xf32>
    %104 = tpu.concatenate %100, %101, %102, %103 in 0 : vector<1x8x16xf32>, vector<1x8x16xf32>, vector<1x8x16xf32>, vector<1x8x16xf32> -> vector<4x8x16xf32>
    %105 = arith.truncf %104 : vector<4x8x16xf32> to vector<4x8x16xbf16>
    %cst_14 = arith.constant dense<0.000000e+00> : vector<4x8x8xf32>
    %106 = tpu.matmul %85, %95, %cst_14 {dimension_numbers = #tpu.dot_dimension_numbers<[2], [2], [1], [1], [0, 0, 0, 1, 1, 1], [0], [0]>} : vector<4x8x16xbf16>, vector<4x8x16xbf16>, vector<4x8x8xf32> -> vector<4x8x8xf32>
    %cst_15 = arith.constant dense<0xFF800000> : vector<4x8xf32>
    %107 = vector.multi_reduction <maximumf>, %106, %cst_15 [2] : vector<4x8x8xf32> to vector<4x8xf32>
    %cst_16 = arith.constant 0xFF800000 : f32
    %108 = vector.broadcast %cst_16 : f32 to vector<4x8xf32>
    %109 = arith.maximumf %108, %107 : vector<4x8xf32>
    %110 = vector.shape_cast %109 : vector<4x8xf32> to vector<4x8x1xf32>
    %111 = vector.broadcast %110 : vector<4x8x1xf32> to vector<4x8x8xf32>
    %112 = arith.subf %106, %111 : vector<4x8x8xf32>
    %113 = math.exp %112 : vector<4x8x8xf32>
    %cst_17 = arith.constant dense<0.000000e+00> : vector<4x8xf32>
    %114 = vector.multi_reduction <add>, %113, %cst_17 [2] : vector<4x8x8xf32> to vector<4x8xf32>
    %115 = vector.shape_cast %114 : vector<4x8xf32> to vector<4x8x1xf32>
    %116 = vector.broadcast %115 : vector<4x8x1xf32> to vector<4x8x8xf32>
    %117 = arith.divf %113, %116 : vector<4x8x8xf32>
    %118 = arith.truncf %117 : vector<4x8x8xf32> to vector<4x8x8xbf16>
    %cst_18 = arith.constant dense<0.000000e+00> : vector<4x8x16xf32>
    %119 = tpu.matmul %118, %105, %cst_18 {dimension_numbers = #tpu.dot_dimension_numbers<[2], [1], [1], [2], [0, 0, 0, 1, 1, 2], [0], [0]>} : vector<4x8x8xbf16>, vector<4x8x16xbf16>, vector<4x8x16xf32> -> vector<4x8x16xf32>
    %120 = vector.extract_strided_slice %119 {offsets = [0, 0, 0], sizes = [1, 8, 16], strides = [1, 1, 1]} : vector<4x8x16xf32> to vector<1x8x16xf32>
    %121 = vector.shape_cast %120 : vector<1x8x16xf32> to vector<8x16xf32>
    %122 = vector.extract_strided_slice %119 {offsets = [1, 0, 0], sizes = [1, 8, 16], strides = [1, 1, 1]} : vector<4x8x16xf32> to vector<1x8x16xf32>
    %123 = vector.shape_cast %122 : vector<1x8x16xf32> to vector<8x16xf32>
    %124 = vector.extract_strided_slice %119 {offsets = [2, 0, 0], sizes = [1, 8, 16], strides = [1, 1, 1]} : vector<4x8x16xf32> to vector<1x8x16xf32>
    %125 = vector.shape_cast %124 : vector<1x8x16xf32> to vector<8x16xf32>
    %126 = vector.extract_strided_slice %119 {offsets = [3, 0, 0], sizes = [1, 8, 16], strides = [1, 1, 1]} : vector<4x8x16xf32> to vector<1x8x16xf32>
    %127 = vector.shape_cast %126 : vector<1x8x16xf32> to vector<8x16xf32>
    %128 = tpu.concatenate %121, %123, %125, %127 in 1 : vector<8x16xf32>, vector<8x16xf32>, vector<8x16xf32>, vector<8x16xf32> -> vector<8x64xf32>
    %129 = tpu.concatenate %74, %128 in 0 : vector<8x64xf32>, vector<8x64xf32> -> vector<16x64xf32>
    %130 = arith.truncf %129 : vector<16x64xf32> to vector<16x64xbf16>
    %c0_19 = arith.constant 0 : index
    %c0_20 = arith.constant 0 : index
    %c0_21 = arith.constant 0 : index
    %131 = vector.load %arg4[%c0_19, %c0_20, %c0_21] : memref<1x64x32xbf16, #tpu.memory_space<vmem>>, vector<1x64x32xbf16>
    %132 = vector.shape_cast %131 : vector<1x64x32xbf16> to vector<64x32xbf16>
    %cst_22 = arith.constant dense<0.000000e+00> : vector<16x32xf32>
    %133 = tpu.matmul %130, %132, %cst_22 {dimension_numbers = #tpu.dot_dimension_numbers<[1], [0], [0], [1], [0, 0, 1, 1], [], []>} : vector<16x64xbf16>, vector<64x32xbf16>, vector<16x32xf32> -> vector<16x32xf32>
    %134 = vector.broadcast %9 : vector<1x32xf32> to vector<16x32xf32>
    %135 = arith.addf %133, %134 : vector<16x32xf32>
    %136 = arith.addf %135, %4 : vector<16x32xf32>
    %cst_23 = arith.constant dense<0.000000e+00> : vector<16xf32>
    %137 = vector.multi_reduction <add>, %136, %cst_23 [1] : vector<16x32xf32> to vector<16xf32>
    %138 = vector.shape_cast %137 : vector<16xf32> to vector<16x1xf32>
    %cst_24 = arith.constant 3.200000e+01 : f32
    %139 = vector.broadcast %cst_24 : f32 to vector<16x1xf32>
    %140 = arith.divf %138, %139 : vector<16x1xf32>
    %141 = vector.broadcast %140 : vector<16x1xf32> to vector<16x32xf32>
    %142 = arith.subf %136, %141 : vector<16x32xf32>
    %143 = arith.mulf %142, %142 : vector<16x32xf32>
    %cst_25 = arith.constant dense<0.000000e+00> : vector<16xf32>
    %144 = vector.multi_reduction <add>, %143, %cst_25 [1] : vector<16x32xf32> to vector<16xf32>
    %145 = vector.shape_cast %144 : vector<16xf32> to vector<16x1xf32>
    %cst_26 = arith.constant 3.200000e+01 : f32
    %146 = vector.broadcast %cst_26 : f32 to vector<16x1xf32>
    %147 = arith.divf %145, %146 : vector<16x1xf32>
    %148 = vector.broadcast %140 : vector<16x1xf32> to vector<16x32xf32>
    %149 = arith.subf %136, %148 : vector<16x32xf32>
    %cst_27 = arith.constant 9.99999997E-7 : f32
    %150 = vector.broadcast %cst_27 : f32 to vector<16x1xf32>
    %151 = arith.addf %147, %150 : vector<16x1xf32>
    %152 = math.rsqrt %151 : vector<16x1xf32>
    %153 = vector.broadcast %152 : vector<16x1xf32> to vector<16x32xf32>
    %154 = arith.mulf %149, %153 : vector<16x32xf32>
    %155 = vector.broadcast %12 : vector<1x32xf32> to vector<16x32xf32>
    %156 = arith.mulf %154, %155 : vector<16x32xf32>
    %157 = vector.broadcast %13 : vector<1x32xf32> to vector<16x32xf32>
    %158 = arith.addf %156, %157 : vector<16x32xf32>
    %159 = arith.truncf %158 : vector<16x32xf32> to vector<16x32xbf16>
    %c0_28 = arith.constant 0 : index
    %c0_29 = arith.constant 0 : index
    %c0_30 = arith.constant 0 : index
    %160 = vector.load %arg5[%c0_28, %c0_29, %c0_30] : memref<1x32x64xbf16, #tpu.memory_space<vmem>>, vector<1x32x64xbf16>
    %161 = vector.shape_cast %160 : vector<1x32x64xbf16> to vector<32x64xbf16>
    %cst_31 = arith.constant dense<0.000000e+00> : vector<16x64xf32>
    %162 = tpu.matmul %159, %161, %cst_31 {dimension_numbers = #tpu.dot_dimension_numbers<[1], [0], [0], [1], [0, 0, 1, 1], [], []>} : vector<16x32xbf16>, vector<32x64xbf16>, vector<16x64xf32> -> vector<16x64xf32>
    %163 = vector.broadcast %10 : vector<1x64xf32> to vector<16x64xf32>
    %164 = arith.addf %162, %163 : vector<16x64xf32>
    %cst_32 = arith.constant 0.000000e+00 : f32
    %165 = vector.broadcast %cst_32 : f32 to vector<16x64xf32>
    %166 = arith.maximumf %164, %165 : vector<16x64xf32>
    %167 = arith.truncf %166 : vector<16x64xf32> to vector<16x64xbf16>
    %c0_33 = arith.constant 0 : index
    %c0_34 = arith.constant 0 : index
    %c0_35 = arith.constant 0 : index
    %168 = vector.load %arg6[%c0_33, %c0_34, %c0_35] : memref<1x64x32xbf16, #tpu.memory_space<vmem>>, vector<1x64x32xbf16>
    %169 = vector.shape_cast %168 : vector<1x64x32xbf16> to vector<64x32xbf16>
    %cst_36 = arith.constant dense<0.000000e+00> : vector<16x32xf32>
    %170 = tpu.matmul %167, %169, %cst_36 {dimension_numbers = #tpu.dot_dimension_numbers<[1], [0], [0], [1], [0, 0, 1, 1], [], []>} : vector<16x64xbf16>, vector<64x32xbf16>, vector<16x32xf32> -> vector<16x32xf32>
    %171 = vector.broadcast %11 : vector<1x32xf32> to vector<16x32xf32>
    %172 = arith.addf %170, %171 : vector<16x32xf32>
    %173 = arith.addf %172, %158 : vector<16x32xf32>
    %cst_37 = arith.constant dense<0.000000e+00> : vector<16xf32>
    %174 = vector.multi_reduction <add>, %173, %cst_37 [1] : vector<16x32xf32> to vector<16xf32>
    %175 = vector.shape_cast %174 : vector<16xf32> to vector<16x1xf32>
    %cst_38 = arith.constant 3.200000e+01 : f32
    %176 = vector.broadcast %cst_38 : f32 to vector<16x1xf32>
    %177 = arith.divf %175, %176 : vector<16x1xf32>
    %178 = vector.broadcast %177 : vector<16x1xf32> to vector<16x32xf32>
    %179 = arith.subf %173, %178 : vector<16x32xf32>
    %180 = arith.mulf %179, %179 : vector<16x32xf32>
    %cst_39 = arith.constant dense<0.000000e+00> : vector<16xf32>
    %181 = vector.multi_reduction <add>, %180, %cst_39 [1] : vector<16x32xf32> to vector<16xf32>
    %182 = vector.shape_cast %181 : vector<16xf32> to vector<16x1xf32>
    %cst_40 = arith.constant 3.200000e+01 : f32
    %183 = vector.broadcast %cst_40 : f32 to vector<16x1xf32>
    %184 = arith.divf %182, %183 : vector<16x1xf32>
    %185 = vector.broadcast %177 : vector<16x1xf32> to vector<16x32xf32>
    %186 = arith.subf %173, %185 : vector<16x32xf32>
    %cst_41 = arith.constant 9.99999997E-7 : f32
    %187 = vector.broadcast %cst_41 : f32 to vector<16x1xf32>
    %188 = arith.addf %184, %187 : vector<16x1xf32>
    %189 = math.rsqrt %188 : vector<16x1xf32>
    %190 = vector.broadcast %189 : vector<16x1xf32> to vector<16x32xf32>
    %191 = arith.mulf %186, %190 : vector<16x32xf32>
    %192 = vector.broadcast %14 : vector<1x32xf32> to vector<16x32xf32>
    %193 = arith.mulf %191, %192 : vector<16x32xf32>
    %194 = vector.broadcast %15 : vector<1x32xf32> to vector<16x32xf32>
    %195 = arith.addf %193, %194 : vector<16x32xf32>
    %196 = vector.shape_cast %195 : vector<16x32xf32> to vector<2x8x32xf32>
    %c0_42 = arith.constant 0 : index
    %c0_43 = arith.constant 0 : index
    %c0_44 = arith.constant 0 : index
    %197 = vector.load %arg8[%c0_42, %c0_43, %c0_44] : memref<2x8x32xf32, #tpu.memory_space<vmem>>, vector<2x8x32xf32>
    tpu.vector_store %arg8[%c0_42, %c0_43, %c0_44], %196 {strides = array<i32>} : memref<2x8x32xf32, #tpu.memory_space<vmem>>, vector<2x8x32xf32>,
    return
  }
  func.func @transform_0(%arg0: i32, %arg1: i32) -> (i32, i32, i32) {
    %c0_i32 = arith.constant 0 : i32
    %c0_i32_0 = arith.constant 0 : i32
    %c0_i32_1 = arith.constant 0 : i32
    return %arg0, %c0_i32, %c0_i32_0 : i32, i32, i32
  }
  func.func @transform_1(%arg0: i32, %arg1: i32) -> (i32, i32, i32) {
    %c0_i32 = arith.constant 0 : i32
    %c0_i32_0 = arith.constant 0 : i32
    %c0_i32_1 = arith.constant 0 : i32
    return %arg1, %c0_i32, %c0_i32_0 : i32, i32, i32
  }
  func.func @transform_2(%arg0: i32, %arg1: i32) -> (i32, i32, i32) {
    %c0_i32 = arith.constant 0 : i32
    %c0_i32_0 = arith.constant 0 : i32
    %c0_i32_1 = arith.constant 0 : i32
    return %arg1, %c0_i32, %c0_i32_0 : i32, i32, i32
  }
  func.func @transform_3(%arg0: i32, %arg1: i32) -> (i32, i32, i32) {
    %c0_i32 = arith.constant 0 : i32
    %c0_i32_0 = arith.constant 0 : i32
    %c0_i32_1 = arith.constant 0 : i32
    return %arg1, %c0_i32, %c0_i32_0 : i32, i32, i32
  }
  func.func @transform_4(%arg0: i32, %arg1: i32) -> (i32, i32, i32) {
    %c0_i32 = arith.constant 0 : i32
    %c0_i32_0 = arith.constant 0 : i32
    %c0_i32_1 = arith.constant 0 : i32
    return %arg1, %c0_i32, %c0_i32_0 : i32, i32, i32
  }
  func.func @transform_5(%arg0: i32, %arg1: i32) -> (i32, i32, i32) {
    %c0_i32 = arith.constant 0 : i32
    %c0_i32_0 = arith.constant 0 : i32
    %c0_i32_1 = arith.constant 0 : i32
    return %arg1, %c0_i32, %c0_i32_0 : i32, i32, i32
  }
  func.func @transform_6(%arg0: i32, %arg1: i32) -> (i32, i32, i32) {
    %c0_i32 = arith.constant 0 : i32
    %c0_i32_0 = arith.constant 0 : i32
    %c0_i32_1 = arith.constant 0 : i32
    return %arg0, %c0_i32, %c0_i32_0 : i32, i32, i32
  }
}

</mosaic_0001>

<bundles_post_ra>
// kernel: tpu_custom_call.1
= control target key start
LH: loop header
LB: loop body
LE: loop exit
PB: predicated region body
PF: predicated region fallthrough
CT: control target
= control target key end

     0   :  { %11 = vsyncpa [#allocation3], 0  ;;  %s2284_s21 = smov 0   ;;  %s2286_s22 = smov 0   ;;  %s2593_s0 = inlined_call_operand.vmem [shape: f32[2,8,32], index: 0, kind: input, shape index: {}]   ;;  %s2594_s1 = inlined_call_operand.vmem [shape: bf16[2,32,192], index: 1, kind: input, shape index: {}]   ;;  %s2595_s2 = inlined_call_operand.vmem [shape: bf16[2,64,32], index: 2, kind: input, shape index: {}]   ;;  %s2596_s3 = inlined_call_operand.vmem [shape: bf16[2,32,64], index: 3, kind: input, shape index: {}]   ;;  %s2597_s4 = inlined_call_operand.vmem [shape: bf16[2,64,32], index: 4, kind: input, shape index: {}]   ;;  %s2598_s5 = inlined_call_operand.vmem [shape: f32[2,8,192], index: 5, kind: input, shape index: {}]   ;;  %s2599_s6 = inlined_call_operand.hbm [shape: f32[2,8,32], index: 6, kind: output, shape index: {}]  }
   0x1   :  { %s2288_s23 = smov 0  }
   0x2 LB: > { %s1836_s24 = sadd.s32 4294967295, %s2234_s23   ;;  %s26_s25 = sadd.s32 1, %s2230_s22  ;;  %s2234_s23 = sphi %s2288_s23, %s17_s23   ;;  %s2230_s22 = sphi %s2286_s22, %s2602_s22   ;;  %s2226_s21 = sphi %s2284_s21, %s2601_s21  }
   0x3   : > { %p27_p0 = scmp.ge.s32.totalorder %s26_s25, 2  ;;  %p1840_p1 = scmp.ge.s32.totalorder %s2234_s23, 1 }
   0x4   : > { %p276_p2 = scmp.lt.s32.totalorder %s2234_s23, 3 }
   0x5   : > { %s2604_s25 = smov (%p27_p0, %s26_s25), 0 }
   0x6   : > { %p277_p3 = pnand %p1840_p1, %p276_p2 }
   0x7   : > { %p332_p4 = scmp.lt.s32.totalorder (!%p277_p3), %s2226_s21, 1  ;;  %p1851_p5 = scmp.ne.s32.totalorder (!%p277_p3), %s2226_s21, 0 }
   0x8   : > { %280 = sbr.rel (%p277_p3) target bundleno = 3246 (0xcae), region = 44 }
   0xf   : > { %s333_s26 = scalar_select %p332_p4, %s2226_s21, 1 }
  0x10   : > { %362 = sbr.rel (%p1851_p5) target bundleno = 23 (0x17), region = 48  ;;  %v363_v0 = vld [vmem:[%s2593_s0] sm:$0xff] (!%p1851_p5)  ;;  %vm365_vm0 = vcmask (!%p1851_p5), 261120   ;;  %v364_v1 = vld [vmem:[%s2593_s0 + $0x8] sm:$0xff] (!%p1851_p5) }
  0x11   : > { %s1890_s27 = sshll.u32 %s333_s26, 5  ;;  %s1892_s28 = sshll.u32 %s333_s26, 4  ;;  %366 = vst.msk [vmem:[#allocation2] sm:$0xff] (!%p1851_p5), %vm365_vm0, %v363_v0  ;;  %367 = vst.msk [vmem:[#allocation2 + $0x8] sm:$0xff] (!%p1851_p5), %vm365_vm0, %v364_v1 }
  0x12   : > { %s336_s7 = scalar_lea.vmem %s2594_s1, %s1890_s27  ;;  %s2309_s10 = scalar_lea.vmem %s2595_s2, %s1890_s27 }
  0x13   : > { %s2314_s13 = scalar_lea.vmem %s2596_s3, %s1892_s28  ;;  %s2319_s16 = scalar_lea.vmem %s2597_s4, %s1890_s27 }
  0x14   : > { %s2324_s19 = scalar_lea.vmem %s2598_s5, %s1892_s28 }
  0x17 PF: > { %v2126_v2 = vld [vmem:[%s336_s7 + $0x4] ss:$8 sps:$4 sm:$0xff]   ;;  %v2128_v3 = vld [vmem:[%s336_s7] ss:$8 sps:$4 sm:$0xff]   ;;  %v2236_v4 = vmov 0   ;;  %vm405_vm1 = vcmask 261120   ;;  %v377_v10 = vlaneseq }
  0x18   : > { %441 = vmatprep.mubr.bf16.mxu1 %v2236_v4  ;;  %409 = vmatprep.subr.bf16.mxu1 %v2126_v2  ;;  %v2129_v5 = vld [vmem:[%s336_s7 + $0x14] ss:$8 sps:$4 sm:$0xff]   ;;  %v2131_v6 = vld [vmem:[%s336_s7 + $0x10] ss:$8 sps:$4 sm:$0xff]   ;;  %v2332_v7 = vld [vmem:[#allocation2] sm:$0xff]  ;;  %v2237_v14 = vmov 0.0  }
  0x19   : > { %410 = vmatpush1.bf16.msra.mxu1 %v2128_v3  ;;  %v2334_v8 = vld [vmem:[#allocation2 + $0x8] sm:$0xff]  ;;  %v2339_v11 = vshrl.u32 %v377_v10, 7  ;;  %v2343_v13 = vld [vmem:[%s2324_s19] sm:$0xff]  ;;  %1946 = vmatprep.subr.bf16.mxu0 %v2237_v14  ;;  %vm2238_vm2 = vmmov 0   ;;  %s2239_s21 = smov 80   ;;  %s2240_s27 = smov 112  }
  0x1a   : > { %411 = vmatprep.subr.bf16.mxu1 %v2129_v5  ;;  %v370_v9 = vpack.c.bf16 %v2334_v8, %v2332_v7  ;;  %1948 = vmatprep.mubr.msk.bf16.mxu0 %vm2238_vm2, %v2237_v14  ;;  %v372_v16 = vld [vmem:[%s2324_s19 + $0x8] sm:$0xff]  ;;  %s2241_s28 = smov 96   ;;  %s2242_s7 = smov 64   ;;  %vm483_vm3 = vcmask 130048   ;;  %vm729_vm4 = vcmask 1043456   ;;  %vm677_vm5 = vcmask 64512  }
  0x1b   : > { %v379_v12 = vsub.s32 0, %v2339_v11  ;;  %s2243_s8 = smov 16   ;;  %s2244_s9 = smov 32   ;;  %vm925_vm6 = vcmask 392192   ;;  %vm1435_vm7 = vcmask 523264  }
  0x1c   : > { %s2245_s11 = smov 48   ;;  %p2556_p6 = scmp.eq.s32.totalorder %s1836_s24, 1 }
  0x1d   : > { %412 = vmatpush1.bf16.msra.mxu1 %v2131_v6  ;;  %v380_v15 = vrot.slane %v2343_v13, %v379_v12  ;;  %v384_v20 = vrot.slane %v372_v16, %v379_v12 }
  0x1e   : > { %1940 = vmatprep.subr.bf16.mxu1 %v2237_v14 }
  0x20   : > { %1856 = vmatmul.mubr.msk.bf16.vlgmr.msra.gmra.mrb[0].mxu1 %vm405_vm1, %v370_v9 }
  0x21   : > { %1942 = vmatprep.mubr.msk.bf16.mxu1 %vm2238_vm2, %v2237_v14 }
  0xf3   : > { %v443_v17 = vpop.f32.mrb[0].mxu1 }
  0xf4   : > { %v444_v18 = vadd.f32 %v443_v17, %v380_v15  ;;  %v445_v19 = vpop.f32.mrb[1].mxu1 }
  0xf5   : > { %v447_v21 = vpop.f32.mrb[2].mxu1  ;;  %v446_v37 = vadd.f32 %v445_v19, %v384_v20 }
  0xf6   : > { %v2353_v22 = vadd.f32 %v447_v21, %v380_v15  ;;  %v449_v23 = vpop.f32.mrb[3].mxu1  ;;  %459 = vrot.lane.b32.xlu1 %v444_v18, %s2239_s21  ;;  %453 = vrot.lane.b32.xlu0 %v444_v18, %s2240_s27  ;;  %v462_v25 = vpack.c.bf16 %v444_v18, %v444_v18 }
  0xf7   : > { %v2357_v24 = vadd.f32 %v449_v23, %v384_v20  ;;  %v476_v41 = vpack.c.bf16 %v446_v37, %v446_v37 }
  0xf9   : > { %v731_v42 = vsel %vm729_vm4, %v476_v41, 0 }
  0xfa   : > { %456 = vrot.lane.b32.xlu0 %v444_v18, %s2241_s28  ;;  %481 = vrot.lane.b32.xlu1 %v462_v25, %s2242_s7 }
 0x168   : > { %v460_v26 = vpop.permute.xlu1 %459  ;;  %v454_v27 = vpop.permute.xlu0 %453 }
 0x169   : > { %v463_v28 = vpack.c.bf16 %v454_v27, %v454_v27  ;;  %v465_v31 = vpack.c.bf16 %v460_v26, %v460_v26 }
 0x16b   : > { %531 = vrot.lane.b32.xlu0 %v463_v28, %s2242_s7 }
 0x16c   : > { %v457_v29 = vpop.permute.xlu0 %456  ;;  %v482_v30 = vpop.permute.xlu1 %481 }
 0x16d   : > { %v464_v32 = vpack.c.bf16 %v457_v29, %v457_v29  ;;  %v488_v33 = vsel %vm483_vm3, %v482_v30, 0 }
 0x16e   : > { %1941 = vmatpush3.bf16.xpose.msra.mxu1 %v488_v33 }
 0x16f   : > { %629 = vrot.lane.b32.xlu0 %v465_v31, %s2242_s7  ;;  %580 = vrot.lane.b32.xlu1 %v464_v32, %s2242_s7 }
 0x170   : > { %1952 = vmatprep.subr.bf16.mxu1 %v2237_v14 }
 0x175   : > { %1943 = vmatmul.mubr.msk.bf16.vlgmr.msra.gmra.mrb[4].mxu1 %vm483_vm3, %v462_v25 }
 0x176   : > { %1954 = vmatprep.mubr.msk.bf16.mxu1 %vm2238_vm2, %v2237_v14 }
 0x1dd   : > { %v532_v34 = vpop.permute.xlu0 %531 }
 0x1de   : > { %v537_v35 = vsel %vm483_vm3, %v532_v34, 0 }
 0x1df   : > { %1947 = vmatpush3.bf16.xpose.msra.mxu0 %v537_v35 }
 0x1e0   : > { %1958 = vmatprep.subr.bf16.mxu0 %v2237_v14 }
 0x1e1   : > { %v581_v36 = vpop.permute.xlu1 %580  ;;  %v630_v39 = vpop.permute.xlu0 %629 }
 0x1e2   : > { %v586_v38 = vsel %vm483_vm3, %v581_v36, 0  ;;  %v635_v40 = vsel %vm483_vm3, %v630_v39, 0 }
 0x1e3   : > { %1953 = vmatpush3.bf16.xpose.msra.mxu1 %v586_v38 }
 0x1e4   : > { %1964 = vmatprep.subr.bf16.mxu1 %v2237_v14 }
 0x1e6   : > { %1949 = vmatmul.mubr.msk.bf16.vlgmr.msra.gmra.mrb[0].mxu0 %vm483_vm3, %v463_v28 }
 0x1e7   : > { %1959 = vmatpush3.bf16.xpose.msra.mxu0 %v635_v40  ;;  %1960 = vmatprep.mubr.msk.bf16.mxu0 %vm2238_vm2, %v2237_v14 }
 0x1e8   : > { %1970 = vmatprep.subr.bf16.mxu0 %v2237_v14 }
 0x1ea   : > { %1955 = vmatmul.mubr.msk.bf16.vlgmr.msra.gmra.mrb[8].mxu1 %vm483_vm3, %v464_v32 }
 0x1eb   : > { %1965 = vmatpush3.bf16.msra.mxu1 %v731_v42  ;;  %1966 = vmatprep.mubr.msk.bf16.mxu1 %vm2238_vm2, %v2237_v14 }
 0x1ec   : > { %1976 = vmatprep.subr.bf16.mxu1 %v2237_v14 }
 0x1ee   : > { %1961 = vmatmul.mubr.msk.bf16.vlgmr.msra.gmra.mrb[4].mxu0 %vm483_vm3, %v465_v31  ;;  %v937_v31 = vpack.c.bf16 %v2353_v22, %v2353_v22 }
 0x1ef   : > { %1972 = vmatprep.mubr.msk.bf16.mxu0 %vm2238_vm2, %v2237_v14 }
 0x248   : > { %v524_v43 = vpop.f32.mrb[4].mxu1 }
 0x249   : > { %v1944_v44 = vpop.f32.mrb[5].mxu1  ;;  %v678_v45 = vsel %vm677_vm5, %v524_v43, -inf }
 0x24a   : > { %679 = vmax.xlane.f32.xlu1 %v678_v45  ;;  %v527_v46 = vpop.f32.mrb[6].mxu1 }
 0x24b   : > { %v1945_v47 = vpop.f32.mrb[7].mxu1 }
 0x2b9   : > { %v573_v48 = vpop.f32.mrb[0].mxu0 }
 0x2ba   : > { %v1950_v49 = vpop.f32.mrb[1].mxu0  ;;  %v681_v50 = vsel %vm677_vm5, %v573_v48, -inf }
 0x2bb   : > { %682 = vmax.xlane.f32.xlu0 %v681_v50  ;;  %v576_v51 = vpop.f32.mrb[2].mxu0 }
 0x2bc   : > { %v1951_v52 = vpop.f32.mrb[3].mxu0 }
 0x2bd   : > { %v622_v53 = vpop.f32.mrb[8].mxu1 }
 0x2be   : > { %v1956_v54 = vpop.f32.mrb[9].mxu1  ;;  %v684_v55 = vsel %vm677_vm5, %v622_v53, -inf }
 0x2bf   : > { %685 = vmax.xlane.f32.xlu0 %v684_v55  ;;  %v625_v56 = vpop.f32.mrb[10].mxu1 }
 0x2c0   : > { %v1957_v57 = vpop.f32.mrb[11].mxu1 }
 0x2c1   : > { %v671_v58 = vpop.f32.mrb[4].mxu0 }
 0x2c2   : > { %v1962_v59 = vpop.f32.mrb[5].mxu0  ;;  %v687_v60 = vsel %vm677_vm5, %v671_v58, -inf }
 0x2c3   : > { %v674_v61 = vpop.f32.mrb[6].mxu0  ;;  %688 = vmax.xlane.f32.xlu1 %v687_v60 }
 0x2c4   : > { %v1963_v62 = vpop.f32.mrb[7].mxu0 }
 0x2d4   : > { %931 = vrot.lane.b32.xlu1 %v2353_v22, %s2241_s28 }
 0x2d5   : > { %928 = vrot.lane.b32.xlu0 %v2353_v22, %s2240_s27 }
 0x2d7   : > { %v680_v63 = vpop.xlane.xlu1 %679 }
 0x2d8   : > { %934 = vrot.lane.b32.xlu1 %v2353_v22, %s2239_s21  ;;  %v690_v0 = vsub.f32 %v524_v43, %v680_v63 }
 0x2d9   : > { %470 = vrot.lane.b32.xlu0 %v446_v37, %s2241_s28 }
 0x2da   : > { %v694_v1 = vmul.f32 1.442695, %v690_v0  ;;  %v951_v0 = vpack.c.bf16 %v2357_v24, %v2357_v24 }
 0x2dc   : > { %467 = vrot.lane.b32.xlu1 %v446_v37, %s2240_s27  ;;  %2142 = vpow2.f32 %v694_v1 }
 0x2e0   : > { %473 = vrot.lane.b32.xlu1 %v446_v37, %s2239_s21 }
 0x2e6   : > { %v2143_v2 = vpop.eup %2142 }
 0x2e7   : > { %v702_v3 = vsel %vm677_vm5, %v2143_v2, 0.0 }
 0x2f8   : > { %703 = vadd.xlane.f32.xlu0 %v702_v3 }
 0x348   : > { %v683_v4 = vpop.xlane.xlu0 %682 }
 0x349   : > { %v691_v5 = vsub.f32 %v573_v48, %v683_v4 }
 0x34b   : > { %v696_v6 = vmul.f32 1.442695, %v691_v5 }
 0x34c   : > { %v686_v9 = vpop.xlane.xlu0 %685 }
 0x34d   : > { %2144 = vpow2.f32 %v696_v6  ;;  %v692_v10 = vsub.f32 %v622_v53, %v686_v9 }
 0x34f   : > { %v698_v12 = vmul.f32 1.442695, %v692_v10 }
 0x350   : > { %v689_v15 = vpop.xlane.xlu1 %688  ;;  %v929_v33 = vpop.permute.xlu0 %928 }
 0x351   : > { %2146 = vpow2.f32 %v698_v12  ;;  %v693_v16 = vsub.f32 %v671_v58, %v689_v15  ;;  %v938_v34 = vpack.c.bf16 %v929_v33, %v929_v33 }
 0x353   : > { %v700_v17 = vmul.f32 1.442695, %v693_v16 }
 0x354   : > { %v932_v18 = vpop.permute.xlu1 %931  ;;  %v471_v36 = vpop.permute.xlu0 %470 }
 0x355   : > { %2148 = vpow2.f32 %v700_v17  ;;  %v2408_v32 = vpack.c.bf16 %v932_v18, %v932_v18  ;;  %v478_v38 = vpack.c.bf16 %v471_v36, %v471_v36 }
 0x357   : > { %v2145_v19 = vpop.eup %2144  ;;  %v823_v41 = vsel %vm729_vm4, %v478_v38, 0 }
 0x358   : > { %v935_v20 = vpop.permute.xlu1 %934  ;;  %v705_v21 = vsel %vm677_vm5, %v2145_v19, 0.0 }
 0x359   : > { %706 = vadd.xlane.f32.xlu1 %v705_v21  ;;  %v2413_v35 = vpack.c.bf16 %v935_v20, %v935_v20 }
 0x35b   : > { %v2147_v23 = vpop.eup %2146 }
 0x35c   : > { %v468_v25 = vpop.permute.xlu1 %467  ;;  %v708_v26 = vsel %vm677_vm5, %v2147_v23, 0.0 }
 0x35d   : > { %v477_v27 = vpack.c.bf16 %v468_v25, %v468_v25  ;;  %709 = vadd.xlane.f32.xlu0 %v708_v26 }
 0x35f   : > { %v2149_v28 = vpop.eup %2148  ;;  %v777_v29 = vsel %vm729_vm4, %v477_v27, 0 }
 0x360   : > { %1971 = vmatpush3.bf16.msra.mxu0 %v777_v29  ;;  %v711_v30 = vsel %vm677_vm5, %v2149_v28, 0.0  ;;  %v474_v42 = vpop.permute.xlu1 %473 }
 0x361   : > { %712 = vadd.xlane.f32.xlu0 %v711_v30  ;;  %1982 = vmatprep.subr.bf16.mxu0 %v2237_v14  ;;  %v479_v47 = vpack.c.bf16 %v474_v42, %v474_v42 }
 0x363   : > { %v869_v51 = vsel %vm729_vm4, %v479_v47, 0 }
 0x36a   : > { %956 = vrot.lane.b32.xlu1 %v937_v31, %s2242_s7 }
 0x36e   : > { %1054 = vrot.lane.b32.xlu1 %v2408_v32, %s2242_s7 }
 0x377   : > { %1005 = vrot.lane.b32.xlu0 %v938_v34, %s2242_s7 }
 0x37b   : > { %1103 = vrot.lane.b32.xlu0 %v2413_v35, %s2242_s7 }
 0x385   : > { %v704_v37 = vpop.xlane.xlu0 %703 }
 0x386   : > { %2150 = vrcp.f32 %v704_v37 }
 0x390   : > { %v2151_v22 = vpop.eup %2150 }
 0x391   : > { %v715_v39 = vmul.f32 %v2151_v22, %v2143_v2  ;;  %v1203_v2 = vsel %vm729_vm4, %v951_v0, 0 }
 0x393   : > { %v722_v40 = vpack.c.bf16 %v715_v39, %v715_v39 }
 0x395   : > { %1967 = vmatmul.mubr.msk.bf16.vlgmr.msra.gmra.mrb[12].mxu1 %vm677_vm5, %v722_v40 }
 0x396   : > { %1977 = vmatpush3.bf16.msra.mxu1 %v823_v41  ;;  %1978 = vmatprep.mubr.msk.bf16.mxu1 %vm2238_vm2, %v2237_v14 }
 0x397   : > { %1988 = vmatprep.subr.bf16.mxu1 %v2237_v14 }
 0x3e6   : > { %v707_v43 = vpop.xlane.xlu1 %706 }
 0x3e7   : > { %2152 = vrcp.f32 %v707_v43 }
 0x3ea   : > { %v710_v44 = vpop.xlane.xlu0 %709  ;;  %v957_v53 = vpop.permute.xlu1 %956 }
 0x3eb   : > { %2154 = vrcp.f32 %v710_v44  ;;  %v962_v56 = vsel %vm483_vm3, %v957_v53, 0 }
 0x3ee   : > { %v713_v45 = vpop.xlane.xlu0 %712  ;;  %v1055_v60 = vpop.permute.xlu1 %1054 }
 0x3ef   : > { %2156 = vrcp.f32 %v713_v45  ;;  %v1060_v62 = vsel %vm483_vm3, %v1055_v60, 0 }
 0x3f1   : > { %v2153_v46 = vpop.eup %2152 }
 0x3f2   : > { %v717_v48 = vmul.f32 %v2153_v46, %v2145_v19  ;;  %v1006_v58 = vpop.permute.xlu0 %1005 }
 0x3f3   : > { %v1011_v61 = vsel %vm483_vm3, %v1006_v58, 0 }
 0x3f4   : > { %v723_v49 = vpack.c.bf16 %v717_v48, %v717_v48 }
 0x3f5   : > { %v2155_v50 = vpop.eup %2154 }
 0x3f6   : > { %v719_v52 = vmul.f32 %v2155_v50, %v2147_v23  ;;  %1973 = vmatmul.mubr.msk.bf16.vlgmr.msra.gmra.mrb[8].mxu0 %vm677_vm5, %v723_v49  ;;  %v1104_v63 = vpop.permute.xlu0 %1103 }
 0x3f7   : > { %1983 = vmatpush3.bf16.msra.mxu0 %v869_v51  ;;  %1984 = vmatprep.mubr.msk.bf16.mxu0 %vm2238_vm2, %v2237_v14  ;;  %v1109_v1 = vsel %vm483_vm3, %v1104_v63, 0 }
 0x3f8   : > { %v724_v54 = vpack.c.bf16 %v719_v52, %v719_v52  ;;  %1994 = vmatprep.subr.bf16.mxu0 %v2237_v14 }
 0x3f9   : > { %v2157_v55 = vpop.eup %2156 }
 0x3fa   : > { %v721_v57 = vmul.f32 %v2157_v55, %v2149_v28  ;;  %1979 = vmatmul.mubr.msk.bf16.vlgmr.msra.gmra.mrb[16].mxu1 %vm677_vm5, %v724_v54 }
 0x3fb   : > { %1989 = vmatpush3.bf16.xpose.msra.mxu1 %v962_v56  ;;  %1990 = vmatprep.mubr.msk.bf16.mxu1 %vm2238_vm2, %v2237_v14 }
 0x3fc   : > { %v725_v59 = vpack.c.bf16 %v721_v57, %v721_v57  ;;  %2000 = vmatprep.subr.bf16.mxu1 %v2237_v14 }
 0x3fe   : > { %1985 = vmatmul.mubr.msk.bf16.vlgmr.msra.gmra.mrb[12].mxu0 %vm677_vm5, %v725_v59 }
 0x3ff   : > { %1996 = vmatprep.mubr.msk.bf16.mxu0 %vm2238_vm2, %v2237_v14 }
 0x400   : > { %1995 = vmatpush3.bf16.xpose.msra.mxu0 %v1011_v61 }
 0x401   : > { %2006 = vmatprep.subr.bf16.mxu0 %v2237_v14 }
 0x402   : > { %1991 = vmatmul.mubr.msk.bf16.vlgmr.msra.gmra.mrb[20].mxu1 %vm483_vm3, %v937_v31 }
 0x403   : > { %2001 = vmatpush3.bf16.xpose.msra.mxu1 %v1060_v62  ;;  %2002 = vmatprep.mubr.msk.bf16.mxu1 %vm2238_vm2, %v2237_v14 }
 0x404   : > { %2012 = vmatprep.subr.bf16.mxu1 %v2237_v14 }
 0x407   : > { %1997 = vmatmul.mubr.msk.bf16.vlgmr.msra.gmra.mrb[16].mxu0 %vm483_vm3, %v938_v34 }
 0x408   : > { %2007 = vmatpush3.bf16.xpose.msra.mxu0 %v1109_v1  ;;  %2008 = vmatprep.mubr.msk.bf16.mxu0 %vm2238_vm2, %v2237_v14 }
 0x409   : > { %2018 = vmatprep.subr.bf16.mxu0 %v2237_v14 }
 0x40a   : > { %2003 = vmatmul.mubr.msk.bf16.vlgmr.msra.gmra.mrb[24].mxu1 %vm483_vm3, %v2408_v32 }
 0x40b   : > { %2013 = vmatpush3.bf16.msra.mxu1 %v1203_v2  ;;  %2014 = vmatprep.mubr.msk.bf16.mxu1 %vm2238_vm2, %v2237_v14 }
 0x40c   : > { %2024 = vmatprep.subr.bf16.mxu1 %v2237_v14 }
 0x40f   : > { %2009 = vmatmul.mubr.msk.bf16.vlgmr.msra.gmra.mrb[20].mxu0 %vm483_vm3, %v2413_v35 }
 0x410   : > { %2020 = vmatprep.mubr.msk.bf16.mxu0 %vm2238_vm2, %v2237_v14 }
 0x468   : > { %v2459_v3 = vpop.f32.mrb[12].mxu1 }
 0x469   : > { %v1968_v4 = vpop.f32.mrb[13].mxu1 }
 0x46a   : > { %v770_v5 = vpop.f32.mrb[14].mxu1 }
 0x46b   : > { %v1969_v6 = vpop.f32.mrb[15].mxu1 }
 0x4c9   : > { %v2461_v9 = vpop.f32.mrb[8].mxu0 }
 0x4ca   : > { %v1974_v10 = vpop.f32.mrb[9].mxu0 }
 0x4cb   : > { %v816_v12 = vpop.f32.mrb[10].mxu0 }
 0x4cc   : > { %v1975_v15 = vpop.f32.mrb[11].mxu0 }
 0x4cd   : > { %v2463_v16 = vpop.f32.mrb[16].mxu1 }
 0x4ce   : > { %v1980_v17 = vpop.f32.mrb[17].mxu1 }
 0x4cf   : > { %v862_v18 = vpop.f32.mrb[18].mxu1 }
 0x4d0   : > { %v1981_v19 = vpop.f32.mrb[19].mxu1 }
 0x4d1   : > { %v2465_v20 = vpop.f32.mrb[12].mxu0 }
 0x4d2   : > { %v1986_v21 = vpop.f32.mrb[13].mxu0 }
 0x4d3   : > { %v908_v23 = vpop.f32.mrb[14].mxu0 }
 0x4d4   : > { %v1987_v25 = vpop.f32.mrb[15].mxu0 }
 0x4d5   : > { %v998_v26 = vpop.f32.mrb[20].mxu1 }
 0x4d6   : > { %v1992_v27 = vpop.f32.mrb[21].mxu1  ;;  %v1151_v28 = vsel %vm677_vm5, %v998_v26, -inf }
 0x4d7   : > { %1152 = vmax.xlane.f32.xlu1 %v1151_v28  ;;  %v1001_v29 = vpop.f32.mrb[22].mxu1 }
 0x4d8   : > { %v1993_v30 = vpop.f32.mrb[23].mxu1 }
 0x4da   : > { %v1047_v31 = vpop.f32.mrb[16].mxu0 }
 0x4db   : > { %v1998_v32 = vpop.f32.mrb[17].mxu0  ;;  %v1154_v33 = vsel %vm677_vm5, %v1047_v31, -inf }
 0x4dc   : > { %1155 = vmax.xlane.f32.xlu0 %v1154_v33  ;;  %v1050_v34 = vpop.f32.mrb[18].mxu0 }
 0x4dd   : > { %v1999_v35 = vpop.f32.mrb[19].mxu0  ;;  %v1096_v36 = vpop.f32.mrb[24].mxu1 }
 0x4de   : > { %v2004_v37 = vpop.f32.mrb[25].mxu1  ;;  %v1157_v22 = vsel %vm677_vm5, %v1096_v36, -inf }
 0x4df   : > { %v1099_v38 = vpop.f32.mrb[26].mxu1 }
 0x4e0   : > { %1158 = vmax.xlane.f32.xlu0 %v1157_v22  ;;  %v2005_v39 = vpop.f32.mrb[27].mxu1  ;;  %v2132_v22 = vld [vmem:[%s2309_s10] sm:$0xff]  }
 0x4e2   : > { %v1145_v40 = vpop.f32.mrb[20].mxu0 }
 0x4e3   : > { %v2010_v41 = vpop.f32.mrb[21].mxu0  ;;  %v1160_v42 = vsel %vm677_vm5, %v1145_v40, -inf }
 0x4e4   : > { %v1148_v43 = vpop.f32.mrb[22].mxu0  ;;  %1161 = vmax.xlane.f32.xlu1 %v1160_v42 }
 0x4e5   : > { %v2011_v44 = vpop.f32.mrb[23].mxu0 }
 0x564   : > { %v1153_v45 = vpop.xlane.xlu1 %1152 }
 0x565   : > { %v1163_v46 = vsub.f32 %v998_v26, %v1153_v45  ;;  %v2134_v45 = vld [vmem:[%s2309_s10 + $0x10] sm:$0xff]  }
 0x567   : > { %v1167_v47 = vmul.f32 1.442695, %v1163_v46 }
 0x569   : > { %2158 = vpow2.f32 %v1167_v47  ;;  %v1156_v48 = vpop.xlane.xlu0 %1155 }
 0x56a   : > { %v1164_v49 = vsub.f32 %v1047_v31, %v1156_v48 }
 0x56c   : > { %v1169_v50 = vmul.f32 1.442695, %v1164_v49 }
 0x56d   : > { %v1159_v51 = vpop.xlane.xlu0 %1158 }
 0x56e   : > { %2160 = vpow2.f32 %v1169_v50  ;;  %v1165_v52 = vsub.f32 %v1096_v36, %v1159_v51 }
 0x570   : > { %v1171_v53 = vmul.f32 1.442695, %v1165_v52 }
 0x571   : > { %v1162_v60 = vpop.xlane.xlu1 %1161 }
 0x572   : > { %2162 = vpow2.f32 %v1171_v53  ;;  %v1166_v61 = vsub.f32 %v1145_v40, %v1162_v60  ;;  %v2133_v40 = vld [vmem:[%s2309_s10 + $0x8] sm:$0xff]  }
 0x573   : > { %v2159_v54 = vpop.eup %2158 }
 0x574   : > { %v1175_v55 = vsel %vm677_vm5, %v2159_v54, 0.0  ;;  %v1173_v62 = vmul.f32 1.442695, %v1166_v61 }
 0x575   : > { %1176 = vadd.xlane.f32.xlu0 %v1175_v55 }
 0x576   : > { %2164 = vpow2.f32 %v1173_v62 }
 0x578   : > { %v2161_v56 = vpop.eup %2160 }
 0x579   : > { %v1178_v57 = vsel %vm677_vm5, %v2161_v56, 0.0 }
 0x57a   : > { %1179 = vadd.xlane.f32.xlu1 %v1178_v57 }
 0x57c   : > { %v2163_v58 = vpop.eup %2162 }
 0x57d   : > { %v1181_v59 = vsel %vm677_vm5, %v2163_v58, 0.0 }
 0x57e   : > { %1182 = vadd.xlane.f32.xlu0 %v1181_v59 }
 0x580   : > { %v2165_v63 = vpop.eup %2164 }
 0x581   : > { %v1184_v0 = vsel %vm677_vm5, %v2165_v63, 0.0 }
 0x58b   : > { %945 = vrot.lane.b32.xlu1 %v2357_v24, %s2241_s28 }
 0x594   : > { %942 = vrot.lane.b32.xlu0 %v2357_v24, %s2240_s27 }
 0x5af   : > { %1185 = vadd.xlane.f32.xlu1 %v1184_v0 }
 0x5c0   : > { %948 = vrot.lane.b32.xlu1 %v2357_v24, %s2239_s21 }
 0x602   : > { %v1177_v1 = vpop.xlane.xlu0 %1176 }
 0x603   : > { %2166 = vrcp.f32 %v1177_v1 }
 0x607   : > { %v1180_v2 = vpop.xlane.xlu1 %1179 }
 0x608   : > { %2168 = vrcp.f32 %v1180_v2 }
 0x60b   : > { %v1183_v4 = vpop.xlane.xlu0 %1182  ;;  %v946_v5 = vpop.permute.xlu1 %945 }
 0x60c   : > { %2170 = vrcp.f32 %v1183_v4  ;;  %v953_v12 = vpack.c.bf16 %v946_v5, %v946_v5 }
 0x60d   : > { %v2167_v6 = vpop.eup %2166 }
 0x60e   : > { %v1188_v10 = vmul.f32 %v2167_v6, %v2159_v54  ;;  %v1295_v21 = vsel %vm729_vm4, %v953_v12, 0  ;;  %v1409_v12 = vsub.s32 1, %v2339_v11 }
 0x60f   : > { %v943_v15 = vpop.permute.xlu0 %942 }
 0x610   : > { %v952_v17 = vpack.c.bf16 %v943_v15, %v943_v15  ;;  %v1195_v18 = vpack.c.bf16 %v1188_v10, %v1188_v10  ;;  %v1410_v15 = vrot.slane %v2343_v13, %v1409_v12 }
 0x612   : > { %v2169_v19 = vpop.eup %2168  ;;  %v1249_v23 = vsel %vm729_vm4, %v952_v17, 0  ;;  %2015 = vmatmul.mubr.msk.bf16.vlgmr.msra.gmra.mrb[28].mxu1 %vm677_vm5, %v1195_v18 }
 0x613   : > { %v1190_v24 = vmul.f32 %v2169_v19, %v2161_v56  ;;  %2019 = vmatpush3.bf16.msra.mxu0 %v1249_v23  ;;  %2025 = vmatpush3.bf16.msra.mxu1 %v1295_v21 }
 0x614   : > { %2026 = vmatprep.mubr.msk.bf16.mxu1 %vm2238_vm2, %v2237_v14  ;;  %2030 = vmatprep.subr.bf16.mxu0 %v2237_v14 }
 0x615   : > { %v1196_v25 = vpack.c.bf16 %v1190_v24, %v1190_v24  ;;  %2036 = vmatprep.subr.bf16.mxu1 %v2237_v14 }
 0x616   : > { %v2171_v26 = vpop.eup %2170 }
 0x617   : > { %v1192_v27 = vmul.f32 %v2171_v26, %v2163_v58  ;;  %2021 = vmatmul.mubr.msk.bf16.vlgmr.msra.gmra.mrb[24].mxu0 %vm677_vm5, %v1196_v25 }
 0x618   : > { %2032 = vmatprep.mubr.msk.bf16.mxu0 %vm2238_vm2, %v2237_v14 }
 0x619   : > { %v1197_v28 = vpack.c.bf16 %v1192_v27, %v1192_v27 }
 0x61b   : > { %2027 = vmatmul.mubr.msk.bf16.vlgmr.msra.gmra.mrb[32].mxu1 %vm677_vm5, %v1197_v28 }
 0x61c   : > { %2044 = vmatprep.mubr.msk.bf16.mxu1 %vm2238_vm2, %v2237_v14  ;;  %2037 = vmatpush3.bf16.msra.mxu1 %v2132_v22 }
 0x61d   : > { %2038 = vmatprep.subr.bf16.mxu1 %v2237_v14 }
 0x620   : > { %2039 = vmatpush3.bf16.msra.mxu1 %v2133_v40 }
 0x621   : > { %2040 = vmatprep.subr.bf16.mxu1 %v2237_v14 }
 0x624   : > { %2041 = vmatpush3.bf16.msra.mxu1 %v2134_v45  ;;  %v1517_v45 = vsub.s32 5, %v2339_v11 }
 0x625   : > { %2042 = vmatprep.subr.bf16.mxu1 %v2237_v14 }
 0x63c   : > { %v1186_v29 = vpop.xlane.xlu1 %1185 }
 0x63d   : > { %2172 = vrcp.f32 %v1186_v29 }
 0x640   : > { %v949_v30 = vpop.permute.xlu1 %948 }
 0x641   : > { %v954_v31 = vpack.c.bf16 %v949_v30, %v949_v30 }
 0x643   : > { %v1341_v32 = vsel %vm729_vm4, %v954_v31, 0 }
 0x644   : > { %2031 = vmatpush3.bf16.msra.mxu0 %v1341_v32 }
 0x645   : > { %2048 = vmatprep.subr.bf16.mxu0 %v2237_v14 }
 0x647   : > { %v2173_v33 = vpop.eup %2172 }
 0x648   : > { %v1194_v34 = vmul.f32 %v2173_v33, %v2165_v63 }
 0x64a   : > { %v1198_v35 = vpack.c.bf16 %v1194_v34, %v1194_v34 }
 0x64c   : > { %2033 = vmatmul.mubr.msk.bf16.vlgmr.msra.gmra.mrb[28].mxu0 %vm677_vm5, %v1198_v35 }
 0x64d   : > { %2052 = vmatprep.mubr.msk.bf16.mxu0 %vm2238_vm2, %v2237_v14 }
 0x6e5   : > { %v1239_v36 = vpop.f32.mrb[28].mxu1 }
 0x6e6   : > { %v2016_v37 = vpop.f32.mrb[29].mxu1 }
 0x6e7   : > { %v1242_v38 = vpop.f32.mrb[30].mxu1  ;;  %v2137_v37 = vld [vmem:[%s2314_s13 + $0x8] sm:$0xff]  }
 0x6e8   : > { %v2017_v39 = vpop.f32.mrb[31].mxu1 }
 0x6ea   : > { %v1285_v41 = vpop.f32.mrb[24].mxu0 }
 0x6eb   : > { %v2111_v42 = vpack.i.bf16 %v1285_v41, %v2461_v9  ;;  %v2022_v43 = vpop.f32.mrb[25].mxu0  ;;  %v2135_v9 = vld [vmem:[%s2309_s10 + $0x18] sm:$0xff]   ;;  %s2246_s10 = smov [#allocation2]  }
 0x6ec   : > { %v1288_v44 = vpop.f32.mrb[26].mxu0  ;;  %2043 = vmatpush3.bf16.msra.mxu1 %v2135_v9  ;;  %v1511_v43 = vsub.s32 4, %v2339_v11  ;;  %s1720_s12 = sshll.u32 %s2246_s10, 4  ;;  %s1721_s12 = int_to_ptr.vmem [resolvable:$true] %s1720_s12 }
 0x6ed   : > { %2112 = vrot.lane.b32.xlu0 %v2111_v42, %s2243_s8  ;;  %v2023_v46 = vpop.f32.mrb[27].mxu0  ;;  %s2182_s14 = scalar_lea.vmem %s1721_s12, 256  ;;  %p2189_p10 = scmp.lt.s32.totalorder %s1721_s12, %s1721_s12 }
 0x6ee   : > { %v1331_v47 = vpop.f32.mrb[32].mxu1  ;;  %v1512_v44 = vrot.slane %v2343_v13, %v1511_v43  ;;  %p2183_p7 = scmp.ne.s32.totalorder %s1721_s12, %s2182_s14  ;;  %p2190_p11 = scmp.lt.s32.totalorder %s2182_s14, %s2182_s14 }
 0x6ef   : > { %v2116_v48 = vpack.i.bf16 %v1331_v47, %v2463_v16  ;;  %v2028_v49 = vpop.f32.mrb[33].mxu1 }
 0x6f0   : > { %v1334_v50 = vpop.f32.mrb[34].mxu1  ;;  %p2184_p8 = pnand %p2183_p7, %p2556_p6  ;;  %p2191_p12 = por %p2190_p11, %p2189_p10 }
 0x6f1   : > { %2117 = vrot.lane.b32.xlu1 %v2116_v48, %s2244_s9  ;;  %v2029_v51 = vpop.f32.mrb[35].mxu1 }
 0x6f2   : > { %v1518_v51 = vrot.slane %v2343_v13, %v1517_v45  ;;  %p2185_p9 = pneg %p2184_p8 }
 0x6f4   : > { %p2192_p13 = pnand %p2191_p12, %p2185_p9 }
 0x71f   : > { %v1377_v52 = vpop.f32.mrb[28].mxu0 }
 0x720   : > { %v2121_v53 = vpack.i.bf16 %v1377_v52, %v2465_v20  ;;  %v2034_v54 = vpop.f32.mrb[29].mxu0 }
 0x721   : > { %v1380_v55 = vpop.f32.mrb[30].mxu0  ;;  %v2138_v54 = vld [vmem:[%s2319_s16] sm:$0xff]  }
 0x722   : > { %2122 = vrot.lane.b32.xlu0 %v2121_v53, %s2245_s11  ;;  %v2035_v56 = vpop.f32.mrb[31].mxu0 }
 0x723   : > { %v2139_v56 = vld [vmem:[%s2319_s16 + $0x8] sm:$0xff]  }
 0x75f   : > { %v2113_v57 = vpop.permute.xlu0 %2112 }
 0x760   : > { %v2115_v58 = vunpack.i.h.bf16 %v2113_v57  ;;  %v2114_v59 = vunpack.i.l.bf16 %v2113_v57  ;;  %v2140_v57 = vld [vmem:[%s2319_s16 + $0x10] sm:$0xff]  }
 0x762   : > { %v1395_v63 = vsel %vm483_vm3, %v1239_v36, %v2115_v58  ;;  %v923_v0 = vsel %vm483_vm3, %v2459_v3, %v2114_v59  ;;  %v1528_v58 = vsub.s32 2, %v2339_v11 }
 0x763   : > { %v2118_v16 = vpop.permute.xlu1 %2117 }
 0x764   : > { %v2120_v60 = vunpack.i.h.bf16 %v2118_v16  ;;  %v2119_v61 = vunpack.i.l.bf16 %v2118_v16  ;;  %v2141_v16 = vld [vmem:[%s2319_s16 + $0x18] sm:$0xff]   ;;  %v1529_v59 = vrot.slane %v2343_v13, %v1528_v58 }
 0x766   : > { %v1396_v2 = vsel %vm405_vm1, %v1395_v63, %v2120_v60  ;;  %v924_v4 = vsel %vm405_vm1, %v923_v0, %v2119_v61 }
 0x794   : > { %v2123_v62 = vpop.permute.xlu0 %2122 }
 0x795   : > { %v2125_v1 = vunpack.i.h.bf16 %v2123_v62  ;;  %v2124_v20 = vunpack.i.l.bf16 %v2123_v62 }
 0x797   : > { %v926_v5 = vsel %vm925_vm6, %v924_v4, %v2124_v20  ;;  %v1397_v6 = vsel %vm925_vm6, %v1396_v2, %v2125_v1 }
 0x798   : > { %v1398_v10 = vpack.c.bf16 %v1397_v6, %v926_v5  ;;  %v1599_v5 = vsub.s32 3, %v2339_v11 }
 0x79a   : > { %2045 = vmatmul.mubr.msk.bf16.vlgmr.msra.gmra.mrb[36].mxu1 %vm1435_vm7, %v1398_v10 }
 0x86d   : > { %v1473_v17 = vpop.f32.mrb[36].mxu1 }
 0x86e   : > { %v1474_v18 = vadd.f32 %v1473_v17, %v1410_v15  ;;  %v2046_v19 = vpop.f32.mrb[37].mxu1 }
 0x86f   : > { %v1476_v3 = vpop.f32.mrb[38].mxu1 }
 0x870   : > { %v1477_v21 = vadd.f32 %v1476_v3, %v1410_v15  ;;  %v2047_v23 = vpop.f32.mrb[39].mxu1  ;;  %v1480_v24 = vadd.f32 %v1474_v18, %v2332_v7 }
 0x872   : > { %v1482_v25 = vsel %vm405_vm1, %v1480_v24, 0.0  ;;  %v1481_v26 = vadd.f32 %v1477_v21, %v2334_v8  ;;  %v2136_v8 = vld [vmem:[%s2314_s13] sm:$0xff]  }
 0x873   : > { %1483 = vadd.xlane.f32.xlu1 %v1482_v25  ;;  %2049 = vmatpush3.bf16.msra.mxu0 %v2136_v8 }
 0x874   : > { %v1485_v27 = vsel %vm405_vm1, %v1481_v26, 0.0  ;;  %2050 = vmatprep.subr.bf16.mxu0 %v2237_v14 }
 0x875   : > { %1486 = vadd.xlane.f32.xlu0 %v1485_v27 }
 0x877   : > { %2051 = vmatpush3.bf16.msra.mxu0 %v2137_v37 }
 0x878   : > { %2056 = vmatprep.subr.bf16.mxu0 %v2237_v14 }
 0x900   : > { %v1484_v28 = vpop.xlane.xlu1 %1483 }
 0x901   : > { %v1489_v29 = vmul.f32 0.03125, %v1484_v28 }
 0x902   : > { %v1487_v30 = vpop.xlane.xlu0 %1486 }
 0x903   : > { %v1491_v31 = vsub.f32 %v1480_v24, %v1489_v29  ;;  %v1490_v32 = vmul.f32 0.03125, %v1487_v30 }
 0x905   : > { %v1492_v33 = vsub.f32 %v1481_v26, %v1490_v32  ;;  %v1493_v34 = vmul.f32 %v1491_v31, %v1491_v31 }
 0x907   : > { %v1495_v35 = vsel %vm405_vm1, %v1493_v34, 0.0  ;;  %v1494_v7 = vmul.f32 %v1492_v33, %v1492_v33 }
 0x908   : > { %1496 = vadd.xlane.f32.xlu0 %v1495_v35 }
 0x909   : > { %v1498_v36 = vsel %vm405_vm1, %v1494_v7, 0.0 }
 0x90a   : > { %1499 = vadd.xlane.f32.xlu1 %v1498_v36 }
 0x995   : > { %v1497_v22 = vpop.xlane.xlu0 %1496 }
 0x996   : > { %v1501_v38 = vmul.f32 0.03125, %v1497_v22  ;;  %v1699_v22 = vsub.s32 6, %v2339_v11 }
 0x997   : > { %v1500_v39 = vpop.xlane.xlu1 %1499 }
 0x998   : > { %v1503_v40 = vadd.f32 1e-06, %v1501_v38  ;;  %v1502_v41 = vmul.f32 0.03125, %v1500_v39  ;;  %v1705_v38 = vsub.s32 7, %v2339_v11  ;;  %v1700_v39 = vrot.slane %v2343_v13, %v1699_v22 }
 0x99a   : > { %2174 = vrsqrt.f32 %v1503_v40  ;;  %v1504_v42 = vadd.f32 1e-06, %v1502_v41 }
 0x99c   : > { %2176 = vrsqrt.f32 %v1504_v42  ;;  %v1706_v42 = vrot.slane %v2343_v13, %v1705_v38 }
 0x9a4   : > { %v2175_v46 = vpop.eup %2174 }
 0x9a5   : > { %v1507_v47 = vmul.f32 %v2175_v46, %v1491_v31 }
 0x9a6   : > { %v2177_v48 = vpop.eup %2176 }
 0x9a7   : > { %v1513_v49 = vmul.f32 %v1512_v44, %v1507_v47  ;;  %v1508_v50 = vmul.f32 %v2177_v48, %v1492_v33 }
 0x9a9   : > { %v1514_v9 = vmul.f32 %v1512_v44, %v1508_v50  ;;  %v1519_v52 = vadd.f32 %v1518_v51, %v1513_v49 }
 0x9ab   : > { %v1520_v53 = vadd.f32 %v1518_v51, %v1514_v9 }
 0x9ad   : > { %v1521_v55 = vpack.c.bf16 %v1520_v53, %v1519_v52 }
 0x9af   : > { %2053 = vmatmul.mubr.msk.bf16.vlgmr.msra.gmra.mrb[32].mxu0 %vm405_vm1, %v1521_v55 }
 0x9b0   : > { %2057 = vmatpush3.bf16.msra.mxu0 %v2138_v54  ;;  %2064 = vmatprep.mubr.msk.bf16.mxu0 %vm2238_vm2, %v2237_v14 }
 0x9b1   : > { %2058 = vmatprep.subr.bf16.mxu0 %v2237_v14 }
 0x9b4   : > { %2059 = vmatpush3.bf16.msra.mxu0 %v2139_v56 }
 0x9b5   : > { %2060 = vmatprep.subr.bf16.mxu0 %v2237_v14 }
 0x9b8   : > { %2061 = vmatpush3.bf16.msra.mxu0 %v2140_v57 }
 0x9b9   : > { %2062 = vmatprep.subr.bf16.mxu0 %v2237_v14  ;;  %v1600_v14 = vrot.slane %v2343_v13, %v1599_v5 }
 0x9bc   : > { %2063 = vmatpush3.bf16.msra.mxu0 %v2141_v16 }
 0xa82   : > { %v1579_v60 = vpop.f32.mrb[32].mxu0 }
 0xa83   : > { %v1580_v61 = vadd.f32 %v1579_v60, %v1529_v59  ;;  %v2054_v62 = vpop.f32.mrb[33].mxu0 }
 0xa84   : > { %v1582_v63 = vpop.f32.mrb[34].mxu0 }
 0xa85   : > { %v1583_v0 = vadd.f32 %v1582_v63, %v1529_v59  ;;  %v2055_v1 = vpop.f32.mrb[35].mxu0  ;;  %v1586_v20 = vmax.f32 %v1580_v61, 0.0 }
 0xa87   : > { %v1587_v2 = vmax.f32 %v1583_v0, 0.0 }
 0xa89   : > { %v1588_v4 = vpack.c.bf16 %v1587_v2, %v1586_v20 }
 0xa8b   : > { %2065 = vmatmul.mubr.msk.bf16.vlgmr.msra.gmra.mrb[36].mxu0 %vm1435_vm7, %v1588_v4 }
 0xb5e   : > { %v1662_v6 = vpop.f32.mrb[36].mxu0 }
 0xb5f   : > { %v1663_v10 = vadd.f32 %v1662_v6, %v1600_v14  ;;  %v2066_v12 = vpop.f32.mrb[37].mxu0 }
 0xb60   : > { %v1665_v15 = vpop.f32.mrb[38].mxu0 }
 0xb61   : > { %v1666_v17 = vadd.f32 %v1665_v15, %v1600_v14  ;;  %v2067_v18 = vpop.f32.mrb[39].mxu0  ;;  %v1669_v19 = vadd.f32 %v1663_v10, %v1519_v52 }
 0xb63   : > { %v1671_v3 = vsel %vm405_vm1, %v1669_v19, 0.0  ;;  %v1670_v21 = vadd.f32 %v1666_v17, %v1520_v53 }
 0xb64   : > { %1672 = vadd.xlane.f32.xlu0 %v1671_v3 }
 0xb65   : > { %v1674_v23 = vsel %vm405_vm1, %v1670_v21, 0.0 }
 0xb66   : > { %1675 = vadd.xlane.f32.xlu1 %v1674_v23 }
 0xbf1   : > { %v1673_v24 = vpop.xlane.xlu0 %1672 }
 0xbf2   : > { %v1677_v25 = vmul.f32 0.03125, %v1673_v24 }
 0xbf3   : > { %v1676_v26 = vpop.xlane.xlu1 %1675 }
 0xbf4   : > { %v1679_v27 = vsub.f32 %v1669_v19, %v1677_v25  ;;  %v1678_v28 = vmul.f32 0.03125, %v1676_v26 }
 0xbf6   : > { %v1680_v29 = vsub.f32 %v1670_v21, %v1678_v28  ;;  %v1681_v30 = vmul.f32 %v1679_v27, %v1679_v27 }
 0xbf8   : > { %v1683_v31 = vsel %vm405_vm1, %v1681_v30, 0.0  ;;  %v1682_v32 = vmul.f32 %v1680_v29, %v1680_v29 }
 0xbf9   : > { %1684 = vadd.xlane.f32.xlu0 %v1683_v31 }
 0xbfa   : > { %v1686_v33 = vsel %vm405_vm1, %v1682_v32, 0.0 }
 0xbfb   : > { %1687 = vadd.xlane.f32.xlu1 %v1686_v33 }
 0xc86   : > { %v1685_v34 = vpop.xlane.xlu0 %1684 }
 0xc87   : > { %v1689_v35 = vmul.f32 0.03125, %v1685_v34 }
 0xc88   : > { %v1688_v7 = vpop.xlane.xlu1 %1687 }
 0xc89   : > { %v1691_v36 = vadd.f32 1e-06, %v1689_v35  ;;  %v1690_v8 = vmul.f32 0.03125, %v1688_v7 }
 0xc8b   : > { %2178 = vrsqrt.f32 %v1691_v36  ;;  %v1692_v37 = vadd.f32 1e-06, %v1690_v8 }
 0xc8d   : > { %2180 = vrsqrt.f32 %v1692_v37 }
 0xc95   : > { %v2179_v40 = vpop.eup %2178 }
 0xc96   : > { %v1695_v41 = vmul.f32 %v2179_v40, %v1679_v27 }
 0xc97   : > { %v2181_v43 = vpop.eup %2180 }
 0xc98   : > { %v1701_v44 = vmul.f32 %v1700_v39, %v1695_v41  ;;  %v1696_v45 = vmul.f32 %v2181_v43, %v1680_v29 }
 0xc9a   : > { %v1702_v46 = vmul.f32 %v1700_v39, %v1696_v45  ;;  %v1707_v47 = vadd.f32 %v1706_v42, %v1701_v44 }
 0xc9c   : > { %v1708_v11 = vadd.f32 %v1706_v42, %v1702_v46  ;;  %1709 = vst.msk [vmem:[#allocation2] sm:$0xff] %vm405_vm1, %v1707_v47 }
 0xc9e   : > { %1710 = vst.msk [vmem:[#allocation2 + $0x8] sm:$0xff] %vm405_vm1, %v1708_v11 }
 0xc9f   : > { %2195 = shalt.err (!%p2192_p13)
}
 0xca0   : > { %s2196_s16 = scalar_lea.hbm %s2599_s6, 256 }
 0xca1   : > { %p2197_p0 = scmp.ne.s32.totalorder %s2599_s6, %s2196_s16  ;;  %p2202_p3 = scmp.lt.u32.totalorder %s2196_s16, %s2599_s6 }
 0xca3   : > { %p2198_p1 = pnand %p2197_p0, %p2556_p6 }
 0xca5   : > { %p2199_p2 = pneg %p2198_p1 }
 0xca7   : > { %p2204_p4 = pnand %p2202_p3, %p2199_p2 }
 0xca9   : > { %2207 = shalt.err (!%p2204_p4)
}
 0xcaa   : > { %s2247_s26 = smov 128   ;;  %s2248_s29 = smov 8  }
 0xcab   : > { %2069 = dma.vmem_to_hbm [thread:$0]  (%p2556_p6), %s1721_s12, 256, %s2599_s6, [#allocation3], %s2247_s26, %s2247_s26, %s2248_s29  }
 0xcac   : > { %2221 = dma.done.wait (%p2556_p6), [#allocation3], 256  }
 0xcad   : > { %2223 = vsyncadd (%p2556_p6), [#allocation3], 4294967040 }
 0xcae PF: > { %s17_s23 = sadd.s32 1, %s2234_s23   ;;  %s2601_s21 = smov %s2230_s22 }
 0xcaf   : > { %p14_p5 = scmp.ge.s32.totalorder %s17_s23, 4   ;;  %s2602_s22 = smov %s2604_s25 }
 0xcb1   :  { %16 = sbr.rel (!%p14_p5) target bundleno = 2 (0x2), region = 91 }
 0xcb8   :  { %1736 = vsyncpa [#allocation3], 1 }
 0xcb9   :  { %1738 = vsyncpa [#allocation3 + $0x1], 1 }

</bundles_post_ra>
